<compile_context>
chip_gen: v7x
topology: tpu7x:2x2x1
jax: 0.10.0
libtpu: 0.0.40
codegen_flags: <defaults>
</compile_context>

<pallas_src>
import functools

import jax
import jax.numpy as jnp
from jax.experimental import pallas as pl
from jax.experimental.pallas import tpu as pltpu


# ------------------------------ fused cell kernel --------------------------- #

def _relu6(x):
    return jnp.minimum(jnp.maximum(x, 0.0), 6.0)


def _cell_kernel(*refs, cfgs):
    """All MBConv blocks of one Gecco2024Cell, fused, for one image.

    Packed activation layout: (H, W*C), lane index = w*C + c (lane dense).
    refs = [x_ref, <per-block weight refs...>, o_ref, <per-block mid scratch>].
    """
    pos = 0
    x_ref = refs[pos]; pos += 1
    wrefs = []
    for cfg in cfgs:
        n = 6 if cfg["has_expand"] else 4
        wrefs.append(refs[pos:pos + n]); pos += n
    o_ref = refs[pos]; pos += 1
    mid_refs = refs[pos:pos + len(cfgs)]

    a = x_ref[...][0].astype(jnp.float32)            # (H, W*Cin) packed

    for cfg, wr, mid_ref in zip(cfgs, wrefs, mid_refs):
        ksize, stride = cfg["ksize"], cfg["stride"]
        pad = ksize // 2
        h, win = cfg["h_in"], cfg["w_in"]
        hout = cfg["h_out"]
        cmid = cfg["cmid"]
        nmid = win * cmid
        r0 = cfg["r0"]                               # 8-aligned interior start

        it = iter(wr)
        if cfg["has_expand"]:
            w_exp_ref, b_exp_ref = next(it), next(it)
        w_dw_ref, b_dw_ref = next(it), next(it)
        w_proj_ref, b_proj_ref = next(it), next(it)

        # ---- stage 1: 1x1 expand as a block-diagonal MXU matmul (BN folded) --
        if cfg["has_expand"]:
            ex = jnp.dot(a, w_exp_ref[...], preferred_element_type=jnp.float32)
            ex = _relu6(ex + b_exp_ref[...])
        else:
            ex = a

        # Zero only the 2*pad vertical halo rows (tiny; done per step so the
        # kernel is correct under any grid partitioning across cores), then
        # write the interior at an 8-aligned row offset (unmasked stores).
        halo = jnp.zeros((pad, nmid), jnp.float32)
        mid_ref[r0 - pad:r0, :] = halo
        mid_ref[r0 + h:r0 + h + pad, :] = halo
        mid_ref[r0:r0 + h, :] = ex

        # ---- stage 2: depthwise KxK (BN folded) + ReLU6 ----
        # Vertical taps: row slices read back from the zero-halo scratch.
        # Horizontal taps: cyclic lane rolls by kw*cmid; the wrap-around /
        # out-of-range columns are already zeroed in the packed weights.
        wd = w_dw_ref[...]                           # (K*K, nmid), edge-masked
        acc = None
        for kh in range(ksize):
            rstart = r0 - pad + kh
            if stride == 1:
                rows = mid_ref[rstart:rstart + hout, :]
            else:
                rows = mid_ref[pl.ds(rstart, hout, stride=stride), :]
            for kw in range(ksize):
                shift = ((pad - kw) * cmid) % nmid
                tap = rows if shift == 0 else pltpu.roll(rows, shift=shift,
                                                         axis=1)
                k = kh * ksize + kw
                term = tap * wd[k:k + 1, :]
                acc = term if acc is None else acc + term
        acc = _relu6(acc + b_dw_ref[...])

        # ---- stage 3: 1x1 project as a stride-aware block-diag MXU matmul ---
        y = jnp.dot(acc, w_proj_ref[...], preferred_element_type=jnp.float32)
        y = y + b_proj_ref[...]
        if cfg["use_res"]:
            y = y + a
        a = y

    o_ref[...] = a[None].astype(o_ref.dtype)


# ------------------------------ block config / packing ---------------------- #

def _mbconv_cfg(cin, cout, cmid, ksize, stride, h_in, w_in):
    pad = ksize // 2
    h_out = (h_in + 2 * pad - ksize) // stride + 1
    w_out = (w_in + 2 * pad - ksize) // stride + 1
    return dict(cin=cin, cout=cout, cmid=cmid, ksize=ksize, stride=stride,
                h_in=h_in, w_in=w_in, h_out=h_out, w_out=w_out,
                has_expand=(cmid != cin),
                use_res=(stride == 1 and cin == cout),
                r0=((pad + 7) // 8) * 8)


def _pack_block_params(raw, cfg):
    """Host-side repack of per-channel weights for the (H, W*C) layout."""
    win, wout = cfg["w_in"], cfg["w_out"]
    cmid, stride = cfg["cmid"], cfg["stride"]
    ksize, pad = cfg["ksize"], cfg["ksize"] // 2
    packed = {}
    if cfg["has_expand"]:
        # block-diagonal (W*Cin, W*Cmid): one 1x1 conv per packed pixel.
        packed["w_exp"] = jnp.kron(jnp.eye(win, dtype=jnp.float32),
                                   raw["w_exp"])
        packed["b_exp"] = jnp.tile(raw["b_exp"], win)[None, :]
    # depthwise: per-tap weight tiled over W, zeroed where the tap would read
    # outside [0, W) so the in-kernel lane rolls need no masking.
    col = jnp.arange(win)
    rows = []
    for kh in range(ksize):
        for kw in range(ksize):
            src = col + kw - pad
            valid = (src >= 0) & (src < win)
            rows.append(jnp.where(valid[:, None],
                                  raw["w_dw"][kh, kw][None, :],
                                  0.0).reshape(-1))
    packed["w_dw"] = jnp.stack(rows, axis=0)                 # (K*K, W*Cmid)
    packed["b_dw"] = jnp.tile(raw["b_dw"], win)[None, :]
    # project: block-diagonal with the horizontal stride folded in (output
    # column wo consumes full-resolution depthwise column wo*stride).
    sel = jnp.zeros((win, wout), jnp.float32)
    sel = sel.at[jnp.arange(wout) * stride, jnp.arange(wout)].set(1.0)
    packed["w_proj"] = jnp.kron(sel, raw["w_proj"])          # (W*Cmid, Wo*Cout)
    packed["b_proj"] = jnp.tile(raw["b_proj"], wout)[None, :]
    return packed


# ------------------------------ cell wrapper -------------------------------- #

def gecco2024_cell_forward(blocks, x_nchw):
    """One fused pallas_call for the whole cell. x_nchw: (N, Cin, H, W)."""
    n, cin0, h, w = x_nchw.shape
    cfg_last = blocks[-1]["cfg"]
    hf, wf, cf = cfg_last["h_out"], cfg_last["w_out"], cfg_last["cout"]

    # one-time lane-dense repack: NCHW -> (N, H, W*C)
    x_packed = jnp.transpose(x_nchw, (0, 2, 3, 1)).reshape(n, h, w * cin0)

    cfgs = tuple(b["cfg"] for b in blocks)
    in_specs = [pl.BlockSpec((1, h, w * cin0), lambda b: (b, 0, 0))]
    args = [x_packed]
    scratch = []
    for blk in blocks:
        cfg, packed = blk["cfg"], blk["packed"]
        names = (["w_exp", "b_exp"] if cfg["has_expand"] else []) + \
                ["w_dw", "b_dw", "w_proj", "b_proj"]
        for nm in names:
            arr = packed[nm]
            in_specs.append(pl.BlockSpec(arr.shape, lambda b: (0, 0)))
            args.append(arr)
        pad = cfg["ksize"] // 2
        scratch.append(pltpu.VMEM(
            (cfg["r0"] + cfg["h_in"] + pad, cfg["w_in"] * cfg["cmid"]),
            jnp.float32))

    out_packed = pl.pallas_call(
        functools.partial(_cell_kernel, cfgs=cfgs),
        out_shape=jax.ShapeDtypeStruct((n, hf, wf * cf), x_nchw.dtype),
        grid=(n,),
        in_specs=in_specs,
        out_specs=pl.BlockSpec((1, hf, wf * cf), lambda b: (b, 0, 0)),
        scratch_shapes=scratch,
        compiler_params=pltpu.CompilerParams(
            dimension_semantics=("parallel",)),
    )(*args)

    return jnp.transpose(out_packed.reshape(n, hf, wf, cf), (0, 3, 1, 2))


# ------------------------------- parameters --------------------------------- #

def _fold_bn(key, c, eps=1e-5):
    k1, k2, k3, k4 = jax.random.split(key, 4)
    gamma = jax.random.uniform(k1, (c,), jnp.float32, 0.5, 1.5)
    beta = 0.1 * jax.random.normal(k2, (c,), jnp.float32)
    mean = 0.1 * jax.random.normal(k3, (c,), jnp.float32)
    var = jax.random.uniform(k4, (c,), jnp.float32, 0.5, 1.5)
    scale = gamma / jnp.sqrt(var + eps)
    bias = beta - mean * scale
    return scale, bias


def _init_block_params(key, in_chn, out_chn, expand_ratio, ksize):
    """Random eval-mode params; BN scale is folded into the conv weights."""
    cmid = in_chn * expand_ratio
    keys = jax.random.split(key, 6)
    p = {}
    if expand_ratio != 1:
        w = 0.1 * jax.random.normal(keys[0], (in_chn, cmid), jnp.float32)
        s, b = _fold_bn(keys[1], cmid)
        p["w_exp"] = w * s[None, :]
        p["b_exp"] = b
    w_dw = 0.1 * jax.random.normal(keys[2], (ksize, ksize, cmid), jnp.float32)
    s, b = _fold_bn(keys[3], cmid)
    p["w_dw"] = w_dw * s[None, None, :]
    p["b_dw"] = b
    w_pj = 0.1 * jax.random.normal(keys[4], (cmid, out_chn), jnp.float32)
    s, b = _fold_bn(keys[5], out_chn)
    p["w_proj"] = w_pj * s[None, :]
    p["b_proj"] = b
    return p


_OP_KERNEL_SIZES = {0: 3, 1: 5, 2: 7}  # op_idx -> depthwise kernel size


def build_gecco2024_cell(chromo, in_chn, out_chn, stride, key, in_hw):
    op_idx, nlayers = chromo[0], chromo[1]
    expand_ratios = chromo[2:]
    ksize = _OP_KERNEL_SIZES[op_idx]
    keys = jax.random.split(key, nlayers)
    blocks = []
    ci, st = in_chn, stride
    h, w = in_hw
    for i in range(nlayers):
        if i > 0:
            ci, st = out_chn, 1
        er = int(expand_ratios[i])
        raw = _init_block_params(keys[i], ci, out_chn, er, ksize)
        cfg = _mbconv_cfg(ci, out_chn, ci * er, ksize, st, h, w)
        blocks.append(dict(cfg=cfg, raw=raw, packed=_pack_block_params(raw, cfg)))
        h, w = cfg["h_out"], cfg["w_out"]
    return blocks


# ---------------------------- pure-JAX reference ----------------------------- #

def _ref_block(x, raw, cfg):
    ksize, stride = cfg["ksize"], cfg["stride"]
    if "w_exp" in raw:
        h = jnp.einsum("nhwc,cd->nhwd", x, raw["w_exp"],
                       precision=jax.lax.Precision.HIGHEST) + raw["b_exp"]
        h = jnp.clip(h, 0.0, 6.0)
    else:
        h = x
    pad = ksize // 2
    n, hh, ww, c = h.shape
    hp = jnp.pad(h, ((0, 0), (pad, pad), (pad, pad), (0, 0)))
    hout = (hh + 2 * pad - ksize) // stride + 1
    wout = (ww + 2 * pad - ksize) // stride + 1
    acc = jnp.zeros((n, hout, wout, c), jnp.float32)
    for kh in range(ksize):
        for kw in range(ksize):
            tap = hp[:, kh:kh + (hout - 1) * stride + 1:stride,
                     kw:kw + (wout - 1) * stride + 1:stride, :]
            acc = acc + tap * raw["w_dw"][kh, kw]
    acc = jnp.clip(acc + raw["b_dw"], 0.0, 6.0)
    y = jnp.einsum("nhwc,cd->nhwd", acc, raw["w_proj"],
                   precision=jax.lax.Precision.HIGHEST) + raw["b_proj"]
    if cfg["use_res"]:
        y = y + x
    return y


def gecco2024_cell_reference(blocks, x_nchw):
    x = jnp.transpose(x_nchw, (0, 2, 3, 1))
    for blk in blocks:
        x = _ref_block(x, blk["raw"], blk["cfg"])
    return jnp.transpose(x, (0, 3, 1, 2))


# ----------------------------------- main ------------------------------------ #

if __name__ == "__main__":
    key = jax.random.PRNGKey(0)
    kx, kp = jax.random.split(key)

    # chromo = [op_idx, nlayers, expand_ratio_0, expand_ratio_1]
    chromo = (0, 2, 2, 2)
    in_chn, out_chn, stride = 4, 8, 1
    H = W = 16

    x = jax.random.normal(kx, (2, in_chn, H, W), jnp.float32)  # NCHW

    blocks = build_gecco2024_cell(chromo, in_chn, out_chn, stride, kp, (H, W))

    fwd = jax.jit(functools.partial(gecco2024_cell_forward, blocks))
    y = fwd(x)
    jax.block_until_ready(y)

    assert y.shape == (2, out_chn, H, W), y.shape
    assert bool(jnp.all(jnp.isfinite(y)))

    y_ref = gecco2024_cell_reference(blocks, x)
    max_err = float(jnp.max(jnp.abs(y - y_ref)))
    mean_err = float(jnp.mean(jnp.abs(y - y_ref)))
    # Tolerances cover the MXU's reduced-precision f32 matmul in the 1x1 stages
    # while still catching any structural (tap / packing / masking) bug.
    assert max_err < 5e-2 and mean_err < 1e-2, (max_err, mean_err)

    print("KERNEL_OK")
</pallas_src>

<mosaic_0001>
module attributes {stable_mosaic.version = 11 : i64} {
  func.func @_cell_kernel(%arg0: i32, %arg1: memref<1x16x64xf32, #tpu.memory_space<vmem>>, %arg2: memref<64x128xf32, #tpu.memory_space<vmem>>, %arg3: memref<1x128xf32, #tpu.memory_space<vmem>>, %arg4: memref<9x128xf32, #tpu.memory_space<vmem>>, %arg5: memref<1x128xf32, #tpu.memory_space<vmem>>, %arg6: memref<128x128xf32, #tpu.memory_space<vmem>>, %arg7: memref<1x128xf32, #tpu.memory_space<vmem>>, %arg8: memref<128x256xf32, #tpu.memory_space<vmem>>, %arg9: memref<1x256xf32, #tpu.memory_space<vmem>>, %arg10: memref<9x256xf32, #tpu.memory_space<vmem>>, %arg11: memref<1x256xf32, #tpu.memory_space<vmem>>, %arg12: memref<256x128xf32, #tpu.memory_space<vmem>>, %arg13: memref<1x128xf32, #tpu.memory_space<vmem>>, %arg14: memref<1x16x128xf32, #tpu.memory_space<vmem>>, %arg15: memref<25x128xf32, #tpu.memory_space<vmem>>, %arg16: memref<25x256xf32, #tpu.memory_space<vmem>>) attributes {dimension_semantics = [#tpu.dimension_semantics<parallel>], iteration_bounds = array<i64: 2>, scalar_prefetch = 0 : i64, scratch_operands = 2 : i64, tpu.core_type = #tpu.core_type<tc>, window_params = [{transform_indices = @transform_0, window_bounds = array<i64: 1, 16, 64>}, {pipeline_mode = #tpu.pipeline_mode<synchronous>, transform_indices = @transform_1, window_bounds = array<i64: 64, 128>}, {pipeline_mode = #tpu.pipeline_mode<synchronous>, transform_indices = @transform_2, window_bounds = array<i64: 1, 128>}, {pipeline_mode = #tpu.pipeline_mode<synchronous>, transform_indices = @transform_3, window_bounds = array<i64: 9, 128>}, {pipeline_mode = #tpu.pipeline_mode<synchronous>, transform_indices = @transform_4, window_bounds = array<i64: 1, 128>}, {pipeline_mode = #tpu.pipeline_mode<synchronous>, transform_indices = @transform_5, window_bounds = array<i64: 128, 128>}, {pipeline_mode = #tpu.pipeline_mode<synchronous>, transform_indices = @transform_6, window_bounds = array<i64: 1, 128>}, {pipeline_mode = #tpu.pipeline_mode<synchronous>, transform_indices = @transform_7, window_bounds = array<i64: 128, 256>}, {pipeline_mode = #tpu.pipeline_mode<synchronous>, transform_indices = @transform_8, window_bounds = array<i64: 1, 256>}, {pipeline_mode = #tpu.pipeline_mode<synchronous>, transform_indices = @transform_9, window_bounds = array<i64: 9, 256>}, {pipeline_mode = #tpu.pipeline_mode<synchronous>, transform_indices = @transform_10, window_bounds = array<i64: 1, 256>}, {pipeline_mode = #tpu.pipeline_mode<synchronous>, transform_indices = @transform_11, window_bounds = array<i64: 256, 128>}, {pipeline_mode = #tpu.pipeline_mode<synchronous>, transform_indices = @transform_12, window_bounds = array<i64: 1, 128>}, {transform_indices = @transform_13, window_bounds = array<i64: 1, 16, 128>}]} {
    %c0 = arith.constant 0 : index
    %c0_0 = arith.constant 0 : index
    %c0_1 = arith.constant 0 : index
    %0 = vector.load %arg1[%c0, %c0_0, %c0_1] : memref<1x16x64xf32, #tpu.memory_space<vmem>>, vector<1x16x64xf32>
    %1 = vector.shape_cast %0 : vector<1x16x64xf32> to vector<16x64xf32>
    %c0_2 = arith.constant 0 : index
    %c0_3 = arith.constant 0 : index
    %2 = vector.load %arg2[%c0_2, %c0_3] : memref<64x128xf32, #tpu.memory_space<vmem>>, vector<64x128xf32>
    %cst = arith.constant dense<0.000000e+00> : vector<16x128xf32>
    %3 = tpu.matmul %1, %2, %cst {dimension_numbers = #tpu.dot_dimension_numbers<[1], [0], [0], [1], [0, 0, 1, 1], [], []>} : vector<16x64xf32>, vector<64x128xf32>, vector<16x128xf32> -> vector<16x128xf32>
    %c0_4 = arith.constant 0 : index
    %c0_5 = arith.constant 0 : index
    %4 = vector.load %arg3[%c0_4, %c0_5] : memref<1x128xf32, #tpu.memory_space<vmem>>, vector<1x128xf32>
    %5 = vector.broadcast %4 : vector<1x128xf32> to vector<16x128xf32>
    %6 = arith.addf %3, %5 : vector<16x128xf32>
    %cst_6 = arith.constant 0.000000e+00 : f32
    %7 = vector.broadcast %cst_6 : f32 to vector<16x128xf32>
    %8 = arith.maximumf %6, %7 : vector<16x128xf32>
    %cst_7 = arith.constant 6.000000e+00 : f32
    %9 = vector.broadcast %cst_7 : f32 to vector<16x128xf32>
    %10 = arith.minimumf %8, %9 : vector<16x128xf32>
    %cst_8 = arith.constant 0.000000e+00 : f32
    %11 = vector.broadcast %cst_8 : f32 to vector<1x128xf32>
    %c7 = arith.constant 7 : index
    %c0_9 = arith.constant 0 : index
    %12 = vector.load %arg15[%c7, %c0_9] : memref<25x128xf32, #tpu.memory_space<vmem>>, vector<1x128xf32>
    tpu.vector_store %arg15[%c7, %c0_9], %11 {strides = array<i32>} : memref<25x128xf32, #tpu.memory_space<vmem>>, vector<1x128xf32>,
    %c24 = arith.constant 24 : index
    %c0_10 = arith.constant 0 : index
    %13 = vector.load %arg15[%c24, %c0_10] : memref<25x128xf32, #tpu.memory_space<vmem>>, vector<1x128xf32>
    tpu.vector_store %arg15[%c24, %c0_10], %11 {strides = array<i32>} : memref<25x128xf32, #tpu.memory_space<vmem>>, vector<1x128xf32>,
    %c8 = arith.constant 8 : index
    %c0_11 = arith.constant 0 : index
    %14 = vector.load %arg15[%c8, %c0_11] : memref<25x128xf32, #tpu.memory_space<vmem>>, vector<16x128xf32>
    tpu.vector_store %arg15[%c8, %c0_11], %10 {strides = array<i32>} : memref<25x128xf32, #tpu.memory_space<vmem>>, vector<16x128xf32>,
    %c0_12 = arith.constant 0 : index
    %c0_13 = arith.constant 0 : index
    %15 = vector.load %arg4[%c0_12, %c0_13] : memref<9x128xf32, #tpu.memory_space<vmem>>, vector<9x128xf32>
    %c7_14 = arith.constant 7 : index
    %c0_15 = arith.constant 0 : index
    %16 = vector.load %arg15[%c7_14, %c0_15] : memref<25x128xf32, #tpu.memory_space<vmem>>, vector<16x128xf32>
    %c8_i32 = arith.constant 8 : i32
    %17 = tpu.dynamic_rotate %16 by %c8_i32 dim 1 : vector<16x128xf32>, i32 -> vector<16x128xf32>
    %18 = vector.extract_strided_slice %15 {offsets = [0, 0], sizes = [1, 128], strides = [1, 1]} : vector<9x128xf32> to vector<1x128xf32>
    %19 = vector.broadcast %18 : vector<1x128xf32> to vector<16x128xf32>
    %20 = arith.mulf %17, %19 : vector<16x128xf32>
    %21 = vector.extract_strided_slice %15 {offsets = [1, 0], sizes = [1, 128], strides = [1, 1]} : vector<9x128xf32> to vector<1x128xf32>
    %22 = vector.broadcast %21 : vector<1x128xf32> to vector<16x128xf32>
    %23 = arith.mulf %16, %22 : vector<16x128xf32>
    %24 = arith.addf %20, %23 : vector<16x128xf32>
    %c120_i32 = arith.constant 120 : i32
    %25 = tpu.dynamic_rotate %16 by %c120_i32 dim 1 : vector<16x128xf32>, i32 -> vector<16x128xf32>
    %26 = vector.extract_strided_slice %15 {offsets = [2, 0], sizes = [1, 128], strides = [1, 1]} : vector<9x128xf32> to vector<1x128xf32>
    %27 = vector.broadcast %26 : vector<1x128xf32> to vector<16x128xf32>
    %28 = arith.mulf %25, %27 : vector<16x128xf32>
    %29 = arith.addf %24, %28 : vector<16x128xf32>
    %c8_16 = arith.constant 8 : index
    %c0_17 = arith.constant 0 : index
    %30 = vector.load %arg15[%c8_16, %c0_17] : memref<25x128xf32, #tpu.memory_space<vmem>>, vector<16x128xf32>
    %c8_i32_18 = arith.constant 8 : i32
    %31 = tpu.dynamic_rotate %30 by %c8_i32_18 dim 1 : vector<16x128xf32>, i32 -> vector<16x128xf32>
    %32 = vector.extract_strided_slice %15 {offsets = [3, 0], sizes = [1, 128], strides = [1, 1]} : vector<9x128xf32> to vector<1x128xf32>
    %33 = vector.broadcast %32 : vector<1x128xf32> to vector<16x128xf32>
    %34 = arith.mulf %31, %33 : vector<16x128xf32>
    %35 = arith.addf %29, %34 : vector<16x128xf32>
    %36 = vector.extract_strided_slice %15 {offsets = [4, 0], sizes = [1, 128], strides = [1, 1]} : vector<9x128xf32> to vector<1x128xf32>
    %37 = vector.broadcast %36 : vector<1x128xf32> to vector<16x128xf32>
    %38 = arith.mulf %30, %37 : vector<16x128xf32>
    %39 = arith.addf %35, %38 : vector<16x128xf32>
    %c120_i32_19 = arith.constant 120 : i32
    %40 = tpu.dynamic_rotate %30 by %c120_i32_19 dim 1 : vector<16x128xf32>, i32 -> vector<16x128xf32>
    %41 = vector.extract_strided_slice %15 {offsets = [5, 0], sizes = [1, 128], strides = [1, 1]} : vector<9x128xf32> to vector<1x128xf32>
    %42 = vector.broadcast %41 : vector<1x128xf32> to vector<16x128xf32>
    %43 = arith.mulf %40, %42 : vector<16x128xf32>
    %44 = arith.addf %39, %43 : vector<16x128xf32>
    %c9 = arith.constant 9 : index
    %c0_20 = arith.constant 0 : index
    %45 = vector.load %arg15[%c9, %c0_20] : memref<25x128xf32, #tpu.memory_space<vmem>>, vector<16x128xf32>
    %c8_i32_21 = arith.constant 8 : i32
    %46 = tpu.dynamic_rotate %45 by %c8_i32_21 dim 1 : vector<16x128xf32>, i32 -> vector<16x128xf32>
    %47 = vector.extract_strided_slice %15 {offsets = [6, 0], sizes = [1, 128], strides = [1, 1]} : vector<9x128xf32> to vector<1x128xf32>
    %48 = vector.broadcast %47 : vector<1x128xf32> to vector<16x128xf32>
    %49 = arith.mulf %46, %48 : vector<16x128xf32>
    %50 = arith.addf %44, %49 : vector<16x128xf32>
    %51 = vector.extract_strided_slice %15 {offsets = [7, 0], sizes = [1, 128], strides = [1, 1]} : vector<9x128xf32> to vector<1x128xf32>
    %52 = vector.broadcast %51 : vector<1x128xf32> to vector<16x128xf32>
    %53 = arith.mulf %45, %52 : vector<16x128xf32>
    %54 = arith.addf %50, %53 : vector<16x128xf32>
    %c120_i32_22 = arith.constant 120 : i32
    %55 = tpu.dynamic_rotate %45 by %c120_i32_22 dim 1 : vector<16x128xf32>, i32 -> vector<16x128xf32>
    %56 = vector.extract_strided_slice %15 {offsets = [8, 0], sizes = [1, 128], strides = [1, 1]} : vector<9x128xf32> to vector<1x128xf32>
    %57 = vector.broadcast %56 : vector<1x128xf32> to vector<16x128xf32>
    %58 = arith.mulf %55, %57 : vector<16x128xf32>
    %59 = arith.addf %54, %58 : vector<16x128xf32>
    %c0_23 = arith.constant 0 : index
    %c0_24 = arith.constant 0 : index
    %60 = vector.load %arg5[%c0_23, %c0_24] : memref<1x128xf32, #tpu.memory_space<vmem>>, vector<1x128xf32>
    %61 = vector.broadcast %60 : vector<1x128xf32> to vector<16x128xf32>
    %62 = arith.addf %59, %61 : vector<16x128xf32>
    %cst_25 = arith.constant 0.000000e+00 : f32
    %63 = vector.broadcast %cst_25 : f32 to vector<16x128xf32>
    %64 = arith.maximumf %62, %63 : vector<16x128xf32>
    %cst_26 = arith.constant 6.000000e+00 : f32
    %65 = vector.broadcast %cst_26 : f32 to vector<16x128xf32>
    %66 = arith.minimumf %64, %65 : vector<16x128xf32>
    %c0_27 = arith.constant 0 : index
    %c0_28 = arith.constant 0 : index
    %67 = vector.load %arg6[%c0_27, %c0_28] : memref<128x128xf32, #tpu.memory_space<vmem>>, vector<128x128xf32>
    %cst_29 = arith.constant dense<0.000000e+00> : vector<16x128xf32>
    %68 = tpu.matmul %66, %67, %cst_29 {dimension_numbers = #tpu.dot_dimension_numbers<[1], [0], [0], [1], [0, 0, 1, 1], [], []>} : vector<16x128xf32>, vector<128x128xf32>, vector<16x128xf32> -> vector<16x128xf32>
    %c0_30 = arith.constant 0 : index
    %c0_31 = arith.constant 0 : index
    %69 = vector.load %arg7[%c0_30, %c0_31] : memref<1x128xf32, #tpu.memory_space<vmem>>, vector<1x128xf32>
    %70 = vector.broadcast %69 : vector<1x128xf32> to vector<16x128xf32>
    %71 = arith.addf %68, %70 : vector<16x128xf32>
    %c0_32 = arith.constant 0 : index
    %c0_33 = arith.constant 0 : index
    %72 = vector.load %arg8[%c0_32, %c0_33] : memref<128x256xf32, #tpu.memory_space<vmem>>, vector<128x256xf32>
    %cst_34 = arith.constant dense<0.000000e+00> : vector<16x256xf32>
    %73 = tpu.matmul %71, %72, %cst_34 {dimension_numbers = #tpu.dot_dimension_numbers<[1], [0], [0], [1], [0, 0, 1, 1], [], []>} : vector<16x128xf32>, vector<128x256xf32>, vector<16x256xf32> -> vector<16x256xf32>
    %c0_35 = arith.constant 0 : index
    %c0_36 = arith.constant 0 : index
    %74 = vector.load %arg9[%c0_35, %c0_36] : memref<1x256xf32, #tpu.memory_space<vmem>>, vector<1x256xf32>
    %75 = vector.broadcast %74 : vector<1x256xf32> to vector<16x256xf32>
    %76 = arith.addf %73, %75 : vector<16x256xf32>
    %cst_37 = arith.constant 0.000000e+00 : f32
    %77 = vector.broadcast %cst_37 : f32 to vector<16x256xf32>
    %78 = arith.maximumf %76, %77 : vector<16x256xf32>
    %cst_38 = arith.constant 6.000000e+00 : f32
    %79 = vector.broadcast %cst_38 : f32 to vector<16x256xf32>
    %80 = arith.minimumf %78, %79 : vector<16x256xf32>
    %cst_39 = arith.constant 0.000000e+00 : f32
    %81 = vector.broadcast %cst_39 : f32 to vector<1x256xf32>
    %c7_40 = arith.constant 7 : index
    %c0_41 = arith.constant 0 : index
    %82 = vector.load %arg16[%c7_40, %c0_41] : memref<25x256xf32, #tpu.memory_space<vmem>>, vector<1x256xf32>
    tpu.vector_store %arg16[%c7_40, %c0_41], %81 {strides = array<i32>} : memref<25x256xf32, #tpu.memory_space<vmem>>, vector<1x256xf32>,
    %c24_42 = arith.constant 24 : index
    %c0_43 = arith.constant 0 : index
    %83 = vector.load %arg16[%c24_42, %c0_43] : memref<25x256xf32, #tpu.memory_space<vmem>>, vector<1x256xf32>
    tpu.vector_store %arg16[%c24_42, %c0_43], %81 {strides = array<i32>} : memref<25x256xf32, #tpu.memory_space<vmem>>, vector<1x256xf32>,
    %c8_44 = arith.constant 8 : index
    %c0_45 = arith.constant 0 : index
    %84 = vector.load %arg16[%c8_44, %c0_45] : memref<25x256xf32, #tpu.memory_space<vmem>>, vector<16x256xf32>
    tpu.vector_store %arg16[%c8_44, %c0_45], %80 {strides = array<i32>} : memref<25x256xf32, #tpu.memory_space<vmem>>, vector<16x256xf32>,
    %c0_46 = arith.constant 0 : index
    %c0_47 = arith.constant 0 : index
    %85 = vector.load %arg10[%c0_46, %c0_47] : memref<9x256xf32, #tpu.memory_space<vmem>>, vector<9x256xf32>
    %c7_48 = arith.constant 7 : index
    %c0_49 = arith.constant 0 : index
    %86 = vector.load %arg16[%c7_48, %c0_49] : memref<25x256xf32, #tpu.memory_space<vmem>>, vector<16x256xf32>
    %c16_i32 = arith.constant 16 : i32
    %87 = tpu.dynamic_rotate %86 by %c16_i32 dim 1 : vector<16x256xf32>, i32 -> vector<16x256xf32>
    %88 = vector.extract_strided_slice %85 {offsets = [0, 0], sizes = [1, 256], strides = [1, 1]} : vector<9x256xf32> to vector<1x256xf32>
    %89 = vector.broadcast %88 : vector<1x256xf32> to vector<16x256xf32>
    %90 = arith.mulf %87, %89 : vector<16x256xf32>
    %91 = vector.extract_strided_slice %85 {offsets = [1, 0], sizes = [1, 256], strides = [1, 1]} : vector<9x256xf32> to vector<1x256xf32>
    %92 = vector.broadcast %91 : vector<1x256xf32> to vector<16x256xf32>
    %93 = arith.mulf %86, %92 : vector<16x256xf32>
    %94 = arith.addf %90, %93 : vector<16x256xf32>
    %c240_i32 = arith.constant 240 : i32
    %95 = tpu.dynamic_rotate %86 by %c240_i32 dim 1 : vector<16x256xf32>, i32 -> vector<16x256xf32>
    %96 = vector.extract_strided_slice %85 {offsets = [2, 0], sizes = [1, 256], strides = [1, 1]} : vector<9x256xf32> to vector<1x256xf32>
    %97 = vector.broadcast %96 : vector<1x256xf32> to vector<16x256xf32>
    %98 = arith.mulf %95, %97 : vector<16x256xf32>
    %99 = arith.addf %94, %98 : vector<16x256xf32>
    %c8_50 = arith.constant 8 : index
    %c0_51 = arith.constant 0 : index
    %100 = vector.load %arg16[%c8_50, %c0_51] : memref<25x256xf32, #tpu.memory_space<vmem>>, vector<16x256xf32>
    %c16_i32_52 = arith.constant 16 : i32
    %101 = tpu.dynamic_rotate %100 by %c16_i32_52 dim 1 : vector<16x256xf32>, i32 -> vector<16x256xf32>
    %102 = vector.extract_strided_slice %85 {offsets = [3, 0], sizes = [1, 256], strides = [1, 1]} : vector<9x256xf32> to vector<1x256xf32>
    %103 = vector.broadcast %102 : vector<1x256xf32> to vector<16x256xf32>
    %104 = arith.mulf %101, %103 : vector<16x256xf32>
    %105 = arith.addf %99, %104 : vector<16x256xf32>
    %106 = vector.extract_strided_slice %85 {offsets = [4, 0], sizes = [1, 256], strides = [1, 1]} : vector<9x256xf32> to vector<1x256xf32>
    %107 = vector.broadcast %106 : vector<1x256xf32> to vector<16x256xf32>
    %108 = arith.mulf %100, %107 : vector<16x256xf32>
    %109 = arith.addf %105, %108 : vector<16x256xf32>
    %c240_i32_53 = arith.constant 240 : i32
    %110 = tpu.dynamic_rotate %100 by %c240_i32_53 dim 1 : vector<16x256xf32>, i32 -> vector<16x256xf32>
    %111 = vector.extract_strided_slice %85 {offsets = [5, 0], sizes = [1, 256], strides = [1, 1]} : vector<9x256xf32> to vector<1x256xf32>
    %112 = vector.broadcast %111 : vector<1x256xf32> to vector<16x256xf32>
    %113 = arith.mulf %110, %112 : vector<16x256xf32>
    %114 = arith.addf %109, %113 : vector<16x256xf32>
    %c9_54 = arith.constant 9 : index
    %c0_55 = arith.constant 0 : index
    %115 = vector.load %arg16[%c9_54, %c0_55] : memref<25x256xf32, #tpu.memory_space<vmem>>, vector<16x256xf32>
    %c16_i32_56 = arith.constant 16 : i32
    %116 = tpu.dynamic_rotate %115 by %c16_i32_56 dim 1 : vector<16x256xf32>, i32 -> vector<16x256xf32>
    %117 = vector.extract_strided_slice %85 {offsets = [6, 0], sizes = [1, 256], strides = [1, 1]} : vector<9x256xf32> to vector<1x256xf32>
    %118 = vector.broadcast %117 : vector<1x256xf32> to vector<16x256xf32>
    %119 = arith.mulf %116, %118 : vector<16x256xf32>
    %120 = arith.addf %114, %119 : vector<16x256xf32>
    %121 = vector.extract_strided_slice %85 {offsets = [7, 0], sizes = [1, 256], strides = [1, 1]} : vector<9x256xf32> to vector<1x256xf32>
    %122 = vector.broadcast %121 : vector<1x256xf32> to vector<16x256xf32>
    %123 = arith.mulf %115, %122 : vector<16x256xf32>
    %124 = arith.addf %120, %123 : vector<16x256xf32>
    %c240_i32_57 = arith.constant 240 : i32
    %125 = tpu.dynamic_rotate %115 by %c240_i32_57 dim 1 : vector<16x256xf32>, i32 -> vector<16x256xf32>
    %126 = vector.extract_strided_slice %85 {offsets = [8, 0], sizes = [1, 256], strides = [1, 1]} : vector<9x256xf32> to vector<1x256xf32>
    %127 = vector.broadcast %126 : vector<1x256xf32> to vector<16x256xf32>
    %128 = arith.mulf %125, %127 : vector<16x256xf32>
    %129 = arith.addf %124, %128 : vector<16x256xf32>
    %c0_58 = arith.constant 0 : index
    %c0_59 = arith.constant 0 : index
    %130 = vector.load %arg11[%c0_58, %c0_59] : memref<1x256xf32, #tpu.memory_space<vmem>>, vector<1x256xf32>
    %131 = vector.broadcast %130 : vector<1x256xf32> to vector<16x256xf32>
    %132 = arith.addf %129, %131 : vector<16x256xf32>
    %cst_60 = arith.constant 0.000000e+00 : f32
    %133 = vector.broadcast %cst_60 : f32 to vector<16x256xf32>
    %134 = arith.maximumf %132, %133 : vector<16x256xf32>
    %cst_61 = arith.constant 6.000000e+00 : f32
    %135 = vector.broadcast %cst_61 : f32 to vector<16x256xf32>
    %136 = arith.minimumf %134, %135 : vector<16x256xf32>
    %c0_62 = arith.constant 0 : index
    %c0_63 = arith.constant 0 : index
    %137 = vector.load %arg12[%c0_62, %c0_63] : memref<256x128xf32, #tpu.memory_space<vmem>>, vector<256x128xf32>
    %cst_64 = arith.constant dense<0.000000e+00> : vector<16x128xf32>
    %138 = tpu.matmul %136, %137, %cst_64 {dimension_numbers = #tpu.dot_dimension_numbers<[1], [0], [0], [1], [0, 0, 1, 1], [], []>} : vector<16x256xf32>, vector<256x128xf32>, vector<16x128xf32> -> vector<16x128xf32>
    %c0_65 = arith.constant 0 : index
    %c0_66 = arith.constant 0 : index
    %139 = vector.load %arg13[%c0_65, %c0_66] : memref<1x128xf32, #tpu.memory_space<vmem>>, vector<1x128xf32>
    %140 = vector.broadcast %139 : vector<1x128xf32> to vector<16x128xf32>
    %141 = arith.addf %138, %140 : vector<16x128xf32>
    %142 = arith.addf %141, %71 : vector<16x128xf32>
    %143 = vector.shape_cast %142 : vector<16x128xf32> to vector<1x16x128xf32>
    %c0_67 = arith.constant 0 : index
    %c0_68 = arith.constant 0 : index
    %c0_69 = arith.constant 0 : index
    %144 = vector.load %arg14[%c0_67, %c0_68, %c0_69] : memref<1x16x128xf32, #tpu.memory_space<vmem>>, vector<1x16x128xf32>
    tpu.vector_store %arg14[%c0_67, %c0_68, %c0_69], %143 {strides = array<i32>} : memref<1x16x128xf32, #tpu.memory_space<vmem>>, vector<1x16x128xf32>,
    return
  }
  func.func @transform_0(%arg0: i32) -> (i32, i32, i32) {
    %c0_i32 = arith.constant 0 : i32
    %c0_i32_0 = arith.constant 0 : i32
    %c0_i32_1 = arith.constant 0 : i32
    return %arg0, %c0_i32, %c0_i32_0 : i32, i32, i32
  }
  func.func @transform_1(%arg0: i32) -> (i32, i32) {
    %c0_i32 = arith.constant 0 : i32
    %c0_i32_0 = arith.constant 0 : i32
    %c0_i32_1 = arith.constant 0 : i32
    return %c0_i32, %c0_i32_0 : i32, i32
  }
  func.func @transform_2(%arg0: i32) -> (i32, i32) {
    %c0_i32 = arith.constant 0 : i32
    %c0_i32_0 = arith.constant 0 : i32
    %c0_i32_1 = arith.constant 0 : i32
    return %c0_i32, %c0_i32_0 : i32, i32
  }
  func.func @transform_3(%arg0: i32) -> (i32, i32) {
    %c0_i32 = arith.constant 0 : i32
    %c0_i32_0 = arith.constant 0 : i32
    %c0_i32_1 = arith.constant 0 : i32
    return %c0_i32, %c0_i32_0 : i32, i32
  }
  func.func @transform_4(%arg0: i32) -> (i32, i32) {
    %c0_i32 = arith.constant 0 : i32
    %c0_i32_0 = arith.constant 0 : i32
    %c0_i32_1 = arith.constant 0 : i32
    return %c0_i32, %c0_i32_0 : i32, i32
  }
  func.func @transform_5(%arg0: i32) -> (i32, i32) {
    %c0_i32 = arith.constant 0 : i32
    %c0_i32_0 = arith.constant 0 : i32
    %c0_i32_1 = arith.constant 0 : i32
    return %c0_i32, %c0_i32_0 : i32, i32
  }
  func.func @transform_6(%arg0: i32) -> (i32, i32) {
    %c0_i32 = arith.constant 0 : i32
    %c0_i32_0 = arith.constant 0 : i32
    %c0_i32_1 = arith.constant 0 : i32
    return %c0_i32, %c0_i32_0 : i32, i32
  }
  func.func @transform_7(%arg0: i32) -> (i32, i32) {
    %c0_i32 = arith.constant 0 : i32
    %c0_i32_0 = arith.constant 0 : i32
    %c0_i32_1 = arith.constant 0 : i32
    return %c0_i32, %c0_i32_0 : i32, i32
  }
  func.func @transform_8(%arg0: i32) -> (i32, i32) {
    %c0_i32 = arith.constant 0 : i32
    %c0_i32_0 = arith.constant 0 : i32
    %c0_i32_1 = arith.constant 0 : i32
    return %c0_i32, %c0_i32_0 : i32, i32
  }
  func.func @transform_9(%arg0: i32) -> (i32, i32) {
    %c0_i32 = arith.constant 0 : i32
    %c0_i32_0 = arith.constant 0 : i32
    %c0_i32_1 = arith.constant 0 : i32
    return %c0_i32, %c0_i32_0 : i32, i32
  }
  func.func @transform_10(%arg0: i32) -> (i32, i32) {
    %c0_i32 = arith.constant 0 : i32
    %c0_i32_0 = arith.constant 0 : i32
    %c0_i32_1 = arith.constant 0 : i32
    return %c0_i32, %c0_i32_0 : i32, i32
  }
  func.func @transform_11(%arg0: i32) -> (i32, i32) {
    %c0_i32 = arith.constant 0 : i32
    %c0_i32_0 = arith.constant 0 : i32
    %c0_i32_1 = arith.constant 0 : i32
    return %c0_i32, %c0_i32_0 : i32, i32
  }
  func.func @transform_12(%arg0: i32) -> (i32, i32) {
    %c0_i32 = arith.constant 0 : i32
    %c0_i32_0 = arith.constant 0 : i32
    %c0_i32_1 = arith.constant 0 : i32
    return %c0_i32, %c0_i32_0 : i32, i32
  }
  func.func @transform_13(%arg0: i32) -> (i32, i32, i32) {
    %c0_i32 = arith.constant 0 : i32
    %c0_i32_0 = arith.constant 0 : i32
    %c0_i32_1 = arith.constant 0 : i32
    return %arg0, %c0_i32, %c0_i32_0 : i32, i32, i32
  }
}

</mosaic_0001>

<bundles_post_ra>
// kernel: gecco2024_cell_forward.1
= control target key start
LH: loop header
LB: loop body
LE: loop exit
PB: predicated region body
PF: predicated region fallthrough
CT: control target
= control target key end

     0   :  { %s2970_s0 = inlined_call_operand.vmem [shape: f32[2,16,64], index: 0, kind: input, shape index: {}]   ;;  %s2971_s1 = inlined_call_operand.vmem [shape: f32[64,128], index: 1, kind: input, shape index: {}]   ;;  %s2972_s2 = inlined_call_operand.hbm [shape: f32[1,128], index: 2, kind: input, shape index: {}]   ;;  %s2973_s3 = inlined_call_operand.vmem [shape: f32[9,128], index: 3, kind: input, shape index: {}]   ;;  %s2974_s4 = inlined_call_operand.hbm [shape: f32[1,128], index: 4, kind: input, shape index: {}]   ;;  %s2975_s5 = inlined_call_operand.vmem [shape: f32[128,128], index: 5, kind: input, shape index: {}]   ;;  %s2976_s6 = inlined_call_operand.hbm [shape: f32[1,128], index: 6, kind: input, shape index: {}]   ;;  %s2977_s7 = inlined_call_operand.hbm [shape: f32[128,256], index: 7, kind: input, shape index: {}]   ;;  %s2978_s8 = inlined_call_operand.hbm [shape: f32[1,256], index: 8, kind: input, shape index: {}]   ;;  %s2979_s9 = inlined_call_operand.hbm [shape: f32[9,256], index: 9, kind: input, shape index: {}]   ;;  %s2980_s10 = inlined_call_operand.hbm [shape: f32[1,256], index: 10, kind: input, shape index: {}]   ;;  %s2981_s11 = inlined_call_operand.vmem [shape: f32[256,128], index: 11, kind: input, shape index: {}]   ;;  %s2982_s12 = inlined_call_operand.vmem [shape: f32[1,128], index: 12, kind: input, shape index: {}]   ;;  %s2983_s13 = inlined_call_operand.vmem [shape: f32[2,16,128], index: 13, kind: output, shape index: {}]  }
   0x1   :  { %2987 = sst [smem:[#allocation20_spill]] %s2974_s4 }
   0x2   :  { %18 = vsyncpa [#allocation5], 0 }
   0x3   :  { %19 = vsyncpa [#allocation7], 0 }
   0x4   :  { %20 = vsyncpa [#allocation10], 0 }
   0x5   :  { %21 = vsyncpa [#allocation13], 0  ;;  %s2238_s25 = smov 0  }
   0x6 LB: > { %2988 = sst [smem:[#allocation19_spill]] %s2152_s25  ;;  %s2154_s26 = smov [#allocation6]   ;;  %s2152_s25 = sphi %s2238_s25, %s27_s25  }
   0x7   : > { %s366_s27 = sshll.u32 %s2154_s26, 4  ;;  %s2244_s28 = sadd.s32 4294967295, %s2152_s25   ;;  %s2249_s27 = int_to_ptr.vmem [resolvable:$true] %s366_s27 }
   0x8   : > { %p1582_p0 = scmp.ge.s32.totalorder %s2152_s25, 1  ;;  %p336_p1 = scmp.lt.s32.totalorder %s2152_s25, 3 }
   0x9   : > { %p2985_p2 = scmp.eq.s32.totalorder %s2244_s28, 0  ;;  %s2155_s30 = smov [#allocation9]  }
   0xa   : > { %p2251_p3 = pnand %p1582_p0, %p336_p1  ;;  %s390_s14 = sshll.u32 %s2155_s30, 4  ;;  %s2257_s14 = int_to_ptr.vmem [resolvable:$true] %s390_s14 }
   0xb   : > { %s2156_s16 = smov [#allocation12]   ;;  %s2157_s18 = smov [#allocation4]  }
   0xc   : > { %s2989_s29 = scalar_select %p2251_p3, 1, 0 }
   0xd   : > { %p1876_p4 = pneg %p2251_p3  ;;  %s414_s17 = sshll.u32 %s2156_s16, 4  ;;  %s2265_s17 = int_to_ptr.vmem [resolvable:$true] %s414_s17 }
   0xe   : > { %s2267_s19 = sshll.u32 %s2157_s18, 4  ;;  %s2991_s4 = sld [smem:[#allocation20_spill]]  ;;  %s353_s19 = int_to_ptr.vmem [resolvable:$true] %s2267_s19 }
   0xf   : > { %p2261_p5 = pnand %p2985_p2, %p1876_p4 }
  0x11   : > { %p2277_p7 = pneg %p2261_p5 }
  0x14   : > { %s1934_s22 = scalar_lea.hbm %s2991_s4, 16 }
  0x15   : > { %p1935_p6 = scmp.ne.s32.totalorder %s2991_s4, %s1934_s22  ;;  %p1941_p10 = scmp.lt.u32.totalorder %s1934_s22, %s2991_s4 }
  0x17   : > { %p1937_p8 = pnand %p2277_p7, %p1935_p6 }
  0x19   : > { %p1938_p9 = pneg %p1937_p8 }
  0x1b   : > { %p1943_p11 = pnand %p1941_p10, %p1938_p9 }
  0x1d   : > { %1946 = shalt.err (!%p1943_p11)
}
  0x1e   : > { %s1947_s18 = scalar_lea.vmem %s2249_s27, 16  ;;  %s1954_s20 = scalar_lea.vmem %s2249_s27, 32 }
  0x1f   : > { %p1948_p12 = scmp.ne.s32.totalorder %s2249_s27, %s1947_s18  ;;  %p1955_p1 = scmp.lt.s32.totalorder %s2249_s27, %s2249_s27 }
  0x20   : > { %p1956_p4 = scmp.lt.s32.totalorder %s1954_s20, %s1947_s18 }
  0x21   : > { %p1950_p13 = pnand %p1948_p12, %p2277_p7 }
  0x22   : > { %p1957_p6 = por %p1956_p4, %p1955_p1 }
  0x23   : > { %p1951_p0 = pneg %p1950_p13 }
  0x25   : > { %p1958_p8 = pnand %p1957_p6, %p1951_p0 }
  0x27   : > { %1961 = shalt.err (!%p1958_p8)
}
  0x28   : > { %1882 = dma.hbm_to_vmem [thread:$0]  (!%p2261_p5), %s2991_s4, 16, %s2249_s27, [#allocation7]  }
  0x29   : > { %s1962_s30 = scalar_lea.hbm %s2977_s7, 4096 }
  0x2a   : > { %p1963_p9 = scmp.ne.s32.totalorder %s2977_s7, %s1962_s30  ;;  %p1969_p12 = scmp.lt.u32.totalorder %s1962_s30, %s2977_s7 }
  0x2c   : > { %p1965_p10 = pnand %p1963_p9, %p2277_p7 }
  0x2e   : > { %p1966_p11 = pneg %p1965_p10 }
  0x30   : > { %p1971_p13 = pnand %p1969_p12, %p1966_p11 }
  0x32   : > { %1974 = shalt.err (!%p1971_p13)
}
  0x33   : > { %s1975_s27 = scalar_lea.vmem %s2257_s14, 4096  ;;  %p1983_p6 = scmp.lt.s32.totalorder %s2257_s14, %s2257_s14 }
  0x34   : > { %p1976_p0 = scmp.ne.s32.totalorder %s2257_s14, %s1975_s27  ;;  %p1984_p8 = scmp.lt.s32.totalorder %s1975_s27, %s1975_s27 }
  0x36   : > { %p1978_p1 = pnand %p1976_p0, %p2277_p7  ;;  %p1985_p9 = por %p1984_p8, %p1983_p6 }
  0x38   : > { %p1979_p4 = pneg %p1978_p1 }
  0x3a   : > { %p1986_p10 = pnand %p1985_p9, %p1979_p4 }
  0x3c   : > { %1989 = shalt.err (!%p1986_p10)
}
  0x3d   : > { %s2158_s25 = smov 256   ;;  %s2159_s21 = smov 16  }
  0x3e   : > { %1888 = dma.hbm_to_vmem [thread:$0]  (!%p2261_p5), %s2977_s7, 4096, %s2257_s14, [#allocation10], %s2158_s25, %s2158_s25, %s2159_s21  }
  0x3f   : > { %s1990_s16 = scalar_lea.hbm %s2979_s9, 512 }
  0x40   : > { %p1991_p11 = scmp.ne.s32.totalorder %s2979_s9, %s1990_s16  ;;  %p1997_p0 = scmp.lt.u32.totalorder %s1990_s16, %s2979_s9 }
  0x42   : > { %p1993_p12 = pnand %p1991_p11, %p2277_p7 }
  0x44   : > { %p1994_p13 = pneg %p1993_p12 }
  0x46   : > { %p1999_p1 = pnand %p1997_p0, %p1994_p13 }
  0x48   : > { %2002 = shalt.err (!%p1999_p1)
}
  0x49   : > { %s2003_s14 = scalar_lea.vmem %s2265_s17, 512  ;;  %p2011_p9 = scmp.lt.s32.totalorder %s2265_s17, %s2265_s17 }
  0x4a   : > { %p2004_p4 = scmp.ne.s32.totalorder %s2265_s17, %s2003_s14  ;;  %p2012_p10 = scmp.lt.s32.totalorder %s2003_s14, %s2003_s14 }
  0x4c   : > { %p2006_p6 = pnand %p2004_p4, %p2277_p7  ;;  %p2013_p11 = por %p2012_p10, %p2011_p9 }
  0x4e   : > { %p2007_p8 = pneg %p2006_p6 }
  0x50   : > { %p2014_p12 = pnand %p2013_p11, %p2007_p8 }
  0x52   : > { %2017 = shalt.err (!%p2014_p12)
}
  0x53   : > { %1894 = dma.hbm_to_vmem [thread:$0]  (!%p2261_p5), %s2979_s9, 512, %s2265_s17, [#allocation13], %s2158_s25, %s2158_s25, %s2159_s21  }
  0x54   : > { %s2018_s30 = scalar_lea.hbm %s2972_s2, 16 }
  0x55   : > { %p2019_p13 = scmp.ne.s32.totalorder %s2972_s2, %s2018_s30  ;;  %p2025_p4 = scmp.lt.u32.totalorder %s2018_s30, %s2972_s2 }
  0x57   : > { %p2021_p0 = pnand %p2019_p13, %p2277_p7 }
  0x59   : > { %p2022_p1 = pneg %p2021_p0 }
  0x5b   : > { %p2027_p6 = pnand %p2025_p4, %p2022_p1 }
  0x5d   : > { %2030 = shalt.err (!%p2027_p6)
}
  0x5e   : > { %s2031_s14 = scalar_lea.vmem %s353_s19, 16  ;;  %s2038_s17 = scalar_lea.vmem %s353_s19, 32 }
  0x5f   : > { %p2032_p8 = scmp.ne.s32.totalorder %s353_s19, %s2031_s14  ;;  %p2039_p11 = scmp.lt.s32.totalorder %s353_s19, %s353_s19 }
  0x60   : > { %p2040_p12 = scmp.lt.s32.totalorder %s2038_s17, %s2031_s14 }
  0x61   : > { %p2034_p9 = pnand %p2032_p8, %p2277_p7 }
  0x62   : > { %p2041_p2 = por %p2040_p12, %p2039_p11 }
  0x63   : > { %p2035_p10 = pneg %p2034_p9 }
  0x65   : > { %p2042_p3 = pnand %p2041_p2, %p2035_p10 }
  0x67   : > { %2045 = shalt.err (!%p2042_p3)
}
  0x68   : > { %1879 = dma.hbm_to_vmem [thread:$0]  (!%p2261_p5), %s2972_s2, 16, %s353_s19, [#allocation5]  }
  0x69   : > { %s2160_s4 = smov [#allocation8]   ;;  %s2161_s23 = smov [#allocation11]  }
  0x6a   : > { %s380_s22 = sshll.u32 %s2160_s4, 4  ;;  %s404_s24 = sshll.u32 %s2161_s23, 4  ;;  %s381_s22 = int_to_ptr.vmem [resolvable:$true] %s380_s22  ;;  %s405_s24 = int_to_ptr.vmem [resolvable:$true] %s404_s24 }
  0x6b   : > { %s2046_s18 = scalar_lea.hbm %s2976_s6, 16 }
  0x6c   : > { %p2047_p2 = scmp.ne.s32.totalorder %s2976_s6, %s2046_s18  ;;  %p2053_p0 = scmp.lt.u32.totalorder %s2046_s18, %s2976_s6 }
  0x6e   : > { %p2049_p3 = pnand %p2047_p2, %p2277_p7 }
  0x70   : > { %p2050_p13 = pneg %p2049_p3 }
  0x72   : > { %p2055_p1 = pnand %p2053_p0, %p2050_p13 }
  0x74   : > { %2058 = shalt.err (!%p2055_p1)
}
  0x75   : > { %s2059_s19 = scalar_lea.vmem %s381_s22, 16  ;;  %s2066_s25 = scalar_lea.vmem %s381_s22, 32 }
  0x76   : > { %p2060_p4 = scmp.ne.s32.totalorder %s381_s22, %s2059_s19  ;;  %p2067_p9 = scmp.lt.s32.totalorder %s381_s22, %s381_s22 }
  0x77   : > { %p2068_p10 = scmp.lt.s32.totalorder %s2066_s25, %s2059_s19 }
  0x78   : > { %p2062_p6 = pnand %p2060_p4, %p2277_p7 }
  0x79   : > { %p2069_p11 = por %p2068_p10, %p2067_p9 }
  0x7a   : > { %p2063_p8 = pneg %p2062_p6 }
  0x7c   : > { %p2070_p12 = pnand %p2069_p11, %p2063_p8 }
  0x7e   : > { %2073 = shalt.err (!%p2070_p12)
}
  0x7f   : > { %1885 = dma.hbm_to_vmem [thread:$0]  (!%p2261_p5), %s2976_s6, 16, %s381_s22, [#allocation7]  }
  0x80   : > { %s2074_s16 = scalar_lea.hbm %s2978_s8, 32 }
  0x81   : > { %p2075_p2 = scmp.ne.s32.totalorder %s2978_s8, %s2074_s16  ;;  %p2081_p0 = scmp.lt.u32.totalorder %s2074_s16, %s2978_s8 }
  0x83   : > { %p2077_p3 = pnand %p2075_p2, %p2277_p7 }
  0x85   : > { %p2078_p13 = pneg %p2077_p3 }
  0x87   : > { %p2083_p1 = pnand %p2081_p0, %p2078_p13 }
  0x89   : > { %2086 = shalt.err (!%p2083_p1)
}
  0x8a   : > { %s2087_s17 = scalar_lea.vmem %s405_s24, 32  ;;  %p2095_p9 = scmp.lt.s32.totalorder %s405_s24, %s405_s24 }
  0x8b   : > { %p2088_p4 = scmp.ne.s32.totalorder %s405_s24, %s2087_s17  ;;  %p2096_p10 = scmp.lt.s32.totalorder %s2087_s17, %s2087_s17 }
  0x8d   : > { %p2090_p6 = pnand %p2088_p4, %p2277_p7  ;;  %p2097_p11 = por %p2096_p10, %p2095_p9 }
  0x8f   : > { %p2091_p8 = pneg %p2090_p6 }
  0x91   : > { %p2098_p12 = pnand %p2097_p11, %p2091_p8 }
  0x93   : > { %2101 = shalt.err (!%p2098_p12)
}
  0x94   : > { %1891 = dma.hbm_to_vmem [thread:$0]  (!%p2261_p5), %s2978_s8, 32, %s405_s24, [#allocation10]  }
  0x95   : > { %s2162_s25 = smov [#allocation14]   ;;  %s2102_s30 = scalar_lea.hbm %s2980_s10, 32 }
  0x96   : > { %s428_s21 = sshll.u32 %s2162_s25, 4  ;;  %p2103_p2 = scmp.ne.s32.totalorder %s2980_s10, %s2102_s30  ;;  %s429_s21 = int_to_ptr.vmem [resolvable:$true] %s428_s21 }
  0x97   : > { %p2109_p0 = scmp.lt.u32.totalorder %s2102_s30, %s2980_s10 }
  0x98   : > { %p2105_p3 = pnand %p2103_p2, %p2277_p7 }
  0x9a   : > { %p2106_p13 = pneg %p2105_p3 }
  0x9c   : > { %p2111_p1 = pnand %p2109_p0, %p2106_p13 }
  0x9e   : > { %2114 = shalt.err (!%p2111_p1)
}
  0x9f   : > { %s2115_s24 = scalar_lea.vmem %s429_s21, 32  ;;  %p2123_p9 = scmp.lt.s32.totalorder %s429_s21, %s429_s21 }
  0xa0   : > { %p2116_p4 = scmp.ne.s32.totalorder %s429_s21, %s2115_s24  ;;  %p2124_p10 = scmp.lt.s32.totalorder %s2115_s24, %s2115_s24 }
  0xa2   : > { %p2118_p6 = pnand %p2116_p4, %p2277_p7  ;;  %p2125_p11 = por %p2124_p10, %p2123_p9 }
  0xa4   : > { %p2119_p8 = pneg %p2118_p6 }
  0xa6   : > { %p2126_p12 = pnand %p2125_p11, %p2119_p8 }
  0xa8   : > { %2129 = shalt.err (!%p2126_p12)
}
  0xa9   : > { %1897 = dma.hbm_to_vmem [thread:$0]  (!%p2261_p5), %s2980_s10, 32, %s429_s21, [#allocation13]  }
  0xaa   : > { %p2993_p2 = scmp.ne.s32.totalorder %s2989_s29, 0 }
  0xab   : > { %p2994_p3 = scmp.eq.s32.totalorder (!%p2993_p2), %s2244_s28, 0 }
  0xac   : > { %455 = sbr.rel (%p2993_p2) target bundleno = 1407 (0x57f), region = 72 }
  0xb3   : > { %2135 = dma.done.wait (%p2994_p3), [#allocation5], 16   ;;  %p2995_p7 = pmov %p2994_p3 }
  0xb4   : > { %p2996_p13 = pmov %p2994_p3 }
  0xb5   : > { %2137 = vsyncadd (%p2995_p7), [#allocation5], 4294967280 }
  0xb6   : > { %2139 = dma.done.wait (%p2996_p13), [#allocation7], 32   ;;  %p2997_p0 = pmov %p2994_p3 }
  0xb8   : > { %2141 = vsyncadd (%p2997_p0), [#allocation7], 4294967264  ;;  %p2998_p1 = pmov %p2997_p0 }
  0xb9   : > { %p2999_p5 = pmov %p2997_p0 }
  0xba   : > { %2143 = dma.done.wait (%p2998_p1), [#allocation10], 4128  }
  0xbb   : > { %2145 = vsyncadd (%p2999_p5), [#allocation10], 4294963168  ;;  %p3000_p4 = pmov %p2997_p0 }
  0xbc   : > { %p3001_p6 = pmov %p2997_p0 }
  0xbd   : > { %2147 = dma.done.wait (%p3000_p4), [#allocation13], 544  }
  0xbe   : > { %2149 = vsyncadd (%p3001_p6), [#allocation13], 4294966752  ;;  %p523_p8 = scmp.lt.s32.totalorder %s2244_s28, 1  ;;  %v535_v0 = vld [vmem:[%s2971_s1] sm:$0xff]  ;;  %v536_v1 = vld [vmem:[%s2971_s1 + $0x8] sm:$0xff]  ;;  %vm550_vm0 = vcmask 523264  }
  0xbf   : > { %v537_v2 = vld [vmem:[%s2971_s1 + $0x10] sm:$0xff]  ;;  %v1736_v3 = vpack.c.bf16 %v536_v1, %v535_v0  ;;  %v538_v4 = vld [vmem:[%s2971_s1 + $0x18] sm:$0xff]  ;;  %v539_v6 = vld [vmem:[%s2971_s1 + $0x20] sm:$0xff]  ;;  %v2163_v14 = vmov 0.0   ;;  %s2164_s20 = smov 8   ;;  %s2165_s21 = smov 120  }
  0xc0   : > { %s3004_s28 = smov (!%p523_p8, %s2244_s28), 1  ;;  %v1740_v5 = vpack.c.bf16 %v538_v4, %v537_v2  ;;  %v540_v7 = vld [vmem:[%s2971_s1 + $0x28] sm:$0xff]  ;;  %v541_v10 = vld [vmem:[%s2971_s1 + $0x30] sm:$0xff]  ;;  %v542_v11 = vld [vmem:[%s2971_s1 + $0x38] sm:$0xff]  ;;  %636 = vst [vmem:[#allocation2 + $0x7] sm:$0x1] %v2163_v14 }
  0xc1   : > { %s1614_s29 = sshll.u32 %s3004_s28, 4  ;;  %1737 = vmatprep.subr.bf16.mxu0 %v1736_v3  ;;  %v1744_v9 = vpack.c.bf16 %v540_v7, %v539_v6  ;;  %v1748_v12 = vpack.c.bf16 %v542_v11, %v541_v10  ;;  %637 = vst [vmem:[#allocation2 + $0x18] sm:$0x1] %v2163_v14  ;;  %v755_v15 = vld [vmem:[%s2975_s5] sm:$0xff]  ;;  %v756_v16 = vld [vmem:[%s2975_s5 + $0x8] sm:$0xff]  ;;  %v757_v24 = vld [vmem:[%s2975_s5 + $0x10] sm:$0xff] }
  0xc2   : > { %s527_s22 = scalar_lea.vmem %s2970_s0, %s1614_s29  ;;  %1739 = vmatpush3.bf16.msra.mxu0 %v1736_v3  ;;  %v1752_v17 = vpack.c.bf16 %v756_v16, %v755_v15  ;;  %v1603_v18 = vld [vmem:[#allocation4] ss:$0 sm:$0xff]  ;;  %v758_v25 = vld [vmem:[%s2975_s5 + $0x18] sm:$0xff]  ;;  %v760_v31 = vld [vmem:[%s2975_s5 + $0x28] sm:$0xff]  ;;  %s2166_s16 = smov 16   ;;  %vm1012_vm2 = vcmask 1040384  }
  0xc3   : > { %v533_v8 = vld [vmem:[%s527_s22] sm:$0xff]  ;;  %1741 = vmatprep.subr.bf16.mxu0 %v1740_v5  ;;  %v534_v13 = vld [vmem:[%s527_s22 + $0x8] sm:$0xff]  ;;  %v1756_v27 = vpack.c.bf16 %v758_v25, %v757_v24  ;;  %v761_v33 = vld [vmem:[%s2975_s5 + $0x30] sm:$0xff]  ;;  %s2167_s18 = smov 112   ;;  %vm1205_vm3 = vcmask 1046528  }
  0xc4   : > { %1698 = vmatprep.mubr.msk.f32.mxu0 %vm550_vm0, %v533_v8  ;;  %1753 = vmatprep.subr.bf16.mxu1 %v1752_v17  ;;  %v759_v30 = vld [vmem:[%s2975_s5 + $0x20] sm:$0xff]  ;;  %v762_v34 = vld [vmem:[%s2975_s5 + $0x38] sm:$0xff]  ;;  %v764_v38 = vld [vmem:[%s2975_s5 + $0x48] sm:$0xff] }
  0xc5   : > { %1755 = vmatpush3.bf16.msra.mxu1 %v1752_v17  ;;  %v1760_v32 = vpack.c.bf16 %v760_v31, %v759_v30  ;;  %v1764_v35 = vpack.c.bf16 %v762_v34, %v761_v33  ;;  %v763_v37 = vld [vmem:[%s2975_s5 + $0x40] sm:$0xff]  ;;  %v765_v41 = vld [vmem:[%s2975_s5 + $0x50] sm:$0xff]  ;;  %v766_v42 = vld [vmem:[%s2975_s5 + $0x58] sm:$0xff]  ;;  %v648_v33 = vlaneseq }
  0xc6   : > { %1743 = vmatpush3.bf16.msra.mxu0 %v1740_v5  ;;  %1757 = vmatprep.subr.bf16.mxu1 %v1756_v27  ;;  %v1768_v39 = vpack.c.bf16 %v764_v38, %v763_v37  ;;  %v1772_v43 = vpack.c.bf16 %v766_v42, %v765_v41  ;;  %v767_v44 = vld [vmem:[%s2975_s5 + $0x60] sm:$0xff]  ;;  %v768_v45 = vld [vmem:[%s2975_s5 + $0x68] sm:$0xff]  ;;  %v769_v47 = vld [vmem:[%s2975_s5 + $0x70] sm:$0xff] }
  0xc7   : > { %1745 = vmatprep.subr.bf16.mxu0 %v1744_v9  ;;  %v1776_v46 = vpack.c.bf16 %v768_v45, %v767_v44  ;;  %v770_v48 = vld [vmem:[%s2975_s5 + $0x78] sm:$0xff]  ;;  %v854_v52 = vld [vmem:[#allocation9 + $0x8] sm:$0xff]  ;;  %v853_v54 = vld [vmem:[#allocation9] sm:$0xff]  ;;  %v649_v34 = vshrl.u32 %v648_v33, 7  ;;  %vm984_vm1 = vcmp.lt.s32.totalorder %v648_v33, 256 }
  0xc8   : > { %v1780_v49 = vpack.c.bf16 %v770_v48, %v769_v47  ;;  %v856_v53 = vld [vmem:[#allocation9 + $0x18] sm:$0xff]  ;;  %v855_v56 = vld [vmem:[#allocation9 + $0x10] sm:$0xff]  ;;  %v858_v57 = vld [vmem:[#allocation9 + $0x28] sm:$0xff]  ;;  %987 = vst.msk [vmem:[#allocation3 + $0x7] ss:$8 sm:$0x3] %vm984_vm1, %v2163_v14 }
  0xc9   : > { %1759 = vmatpush3.bf16.msra.mxu1 %v1756_v27  ;;  %v1784_v55 = vpack.c.bf16 %v856_v53, %v854_v52  ;;  %v860_v58 = vld [vmem:[#allocation9 + $0x38] sm:$0xff]  ;;  %v1786_v59 = vpack.c.bf16 %v855_v56, %v853_v54  ;;  %v857_v61 = vld [vmem:[#allocation9 + $0x20] sm:$0xff]  ;;  %v859_v62 = vld [vmem:[#allocation9 + $0x30] sm:$0xff]  ;;  %v2564_v37 = vsub.s32 1, %v649_v34  ;;  %v2575_v48 = vsub.s32 4, %v649_v34 }
  0xca   : > { %1747 = vmatpush3.bf16.msra.mxu0 %v1744_v9  ;;  %1761 = vmatprep.subr.bf16.mxu1 %v1760_v32  ;;  %v1788_v60 = vpack.c.bf16 %v860_v58, %v858_v57  ;;  %v862_v63 = vld [vmem:[#allocation9 + $0x48] sm:$0xff]  ;;  %v864_v0 = vld [vmem:[#allocation9 + $0x58] sm:$0xff]  ;;  %v1790_v1 = vpack.c.bf16 %v859_v62, %v857_v61  ;;  %v861_v3 = vld [vmem:[#allocation9 + $0x40] sm:$0xff]  ;;  %990 = vst.msk [vmem:[#allocation3 + $0x30] ss:$8 sm:$0x3] %vm984_vm1, %v2163_v14 }
  0xcb   : > { %1749 = vmatprep.subr.bf16.mxu0 %v1748_v12  ;;  %v1792_v2 = vpack.c.bf16 %v864_v0, %v862_v63  ;;  %v863_v4 = vld [vmem:[#allocation9 + $0x50] sm:$0xff]  ;;  %v866_v5 = vld [vmem:[#allocation9 + $0x68] sm:$0xff]  ;;  %v868_v6 = vld [vmem:[#allocation9 + $0x78] sm:$0xff]  ;;  %v2584_v0 = vsub.s32 6, %v649_v34 }
  0xcc   : > { %v1794_v7 = vpack.c.bf16 %v863_v4, %v861_v3  ;;  %v1796_v8 = vpack.c.bf16 %v868_v6, %v866_v5  ;;  %v865_v9 = vld [vmem:[#allocation9 + $0x60] sm:$0xff]  ;;  %v867_v10 = vld [vmem:[#allocation9 + $0x70] sm:$0xff]  ;;  %v870_v11 = vld [vmem:[#allocation9 + $0x88] sm:$0xff] }
  0xcd   : > { %1763 = vmatpush3.bf16.msra.mxu1 %v1760_v32  ;;  %v869_v16 = vld [vmem:[#allocation9 + $0x80] sm:$0xff]  ;;  %v871_v17 = vld [vmem:[#allocation9 + $0x90] sm:$0xff]  ;;  %v878_v24 = vld [vmem:[#allocation9 + $0xc8] sm:$0xff] }
  0xce   : > { %1751 = vmatpush3.bf16.msra.mxu0 %v1748_v12  ;;  %1765 = vmatprep.subr.bf16.mxu1 %v1764_v35  ;;  %v872_v12 = vld [vmem:[#allocation9 + $0x98] sm:$0xff]  ;;  %v877_v30 = vld [vmem:[#allocation9 + $0xc0] sm:$0xff]  ;;  %v879_v31 = vld [vmem:[#allocation9 + $0xd0] sm:$0xff] }
  0xcf   : > { %1785 = vmatprep.subr.bf16.mxu0 %v1784_v55  ;;  %v1800_v15 = vpack.c.bf16 %v872_v12, %v870_v11  ;;  %v880_v25 = vld [vmem:[#allocation9 + $0xd8] sm:$0xff]  ;;  %v1810_v32 = vpack.c.bf16 %v879_v31, %v877_v30  ;;  %v2579_v55 = vsub.s32 5, %v649_v34 }
  0xd0   : > { %v1808_v27 = vpack.c.bf16 %v880_v25, %v878_v24  ;;  %v640_v38 = vld [vmem:[%s2973_s3] sm:$0xff] }
  0xd1   : > { %1699 = vmatmul.mubr.msk.f32.vlgmr.msra.gmra.mrb[0].mxu0 %vm550_vm0, %v534_v13  ;;  %1767 = vmatpush3.bf16.msra.mxu1 %v1764_v35  ;;  %v1798_v13 = vpack.c.bf16 %v867_v10, %v865_v9  ;;  %v2562_v35 = vsub.s32 0, %v649_v34  ;;  %v657_v42 = vrot.slane %v640_v38, %v2564_v37  ;;  %v717_v11 = vrot.slane %v640_v38, %v2584_v0 }
  0xd2   : > { %961 = vmatprep.mubr.f32.mxu0 %v2163_v14  ;;  %1769 = vmatprep.subr.bf16.mxu1 %v1768_v39 }
  0xd3   : > { %1787 = vmatpush1.bf16.msra.mxu0 %v1786_v59  ;;  %v651_v41 = vrot.slane %v640_v38, %v2562_v35 }
  0xd4   : > { %1789 = vmatprep.subr.bf16.mxu0 %v1788_v60  ;;  %v691_v60 = vrot.slane %v640_v38, %v2575_v48 }
  0xd5   : > { %1771 = vmatpush3.bf16.msra.mxu1 %v1768_v39 }
  0xd6   : > { %1773 = vmatprep.subr.bf16.mxu1 %v1772_v43 }
  0xd7   : > { %1791 = vmatpush1.bf16.msra.mxu0 %v1790_v1 }
  0xd8   : > { %1793 = vmatprep.subr.bf16.mxu0 %v1792_v2  ;;  %v703_v2 = vrot.slane %v640_v38, %v2579_v55 }
  0xd9   : > { %1775 = vmatpush3.bf16.msra.mxu1 %v1772_v43  ;;  %v2571_v43 = vsub.s32 2, %v649_v34 }
  0xda   : > { %1777 = vmatprep.subr.bf16.mxu1 %v1776_v46 }
  0xdb   : > { %1795 = vmatpush1.bf16.msra.mxu0 %v1794_v7  ;;  %v669_v52 = vrot.slane %v640_v38, %v2571_v43 }
  0xdc   : > { %1797 = vmatprep.subr.bf16.mxu0 %v1796_v8 }
  0xdd   : > { %1779 = vmatpush3.bf16.msra.mxu1 %v1776_v46  ;;  %v2573_v46 = vsub.s32 3, %v649_v34 }
  0xde   : > { %1781 = vmatprep.subr.bf16.mxu1 %v1780_v49 }
  0xdf   : > { %1799 = vmatpush1.bf16.msra.mxu0 %v1798_v13  ;;  %v683_v57 = vrot.slane %v640_v38, %v2573_v46 }
  0xe0   : > { %1801 = vmatprep.subr.bf16.mxu0 %v1800_v15 }
  0xe1   : > { %1783 = vmatpush3.bf16.msra.mxu1 %v1780_v49 }
 0x1a4   : > { %v1700_v19 = vpop.f32.mrb[0].mxu0 }
 0x1a5   : > { %v629_v20 = vadd.f32 %v1700_v19, %v1603_v18  ;;  %v623_v21 = vpop.f32.mrb[1].mxu0  ;;  %v876_v19 = vld [vmem:[#allocation9 + $0xb8] sm:$0xff] }
 0x1a6   : > { %v624_v22 = vadd.f32 %v1603_v18, %v623_v21  ;;  %v874_v18 = vld [vmem:[#allocation9 + $0xa8] sm:$0xff] }
 0x1a7   : > { %v633_v23 = vmax.f32 %v629_v20, 0.0  ;;  %v1802_v20 = vpack.c.bf16 %v871_v17, %v869_v16  ;;  %v1804_v21 = vpack.c.bf16 %v876_v19, %v874_v18 }
 0x1a8   : > { %v632_v26 = vmax.f32 %v624_v22, 0.0  ;;  %v873_v22 = vld [vmem:[#allocation9 + $0xa0] sm:$0xff] }
 0x1a9   : > { %v2487_v28 = vmin.f32 %v633_v23, 6.0  ;;  %v875_v23 = vld [vmem:[#allocation9 + $0xb0] sm:$0xff]  ;;  %1803 = vmatpush1.bf16.msra.mxu0 %v1802_v20 }
 0x1aa   : > { %v2489_v29 = vmin.f32 %v632_v26, 6.0  ;;  %v1806_v26 = vpack.c.bf16 %v875_v23, %v873_v22  ;;  %1805 = vmatprep.subr.bf16.mxu0 %v1804_v21 }
 0x1ab   : > { %639 = vst [vmem:[#allocation2 + $0x10] sm:$0xff] %v2487_v28  ;;  %678 = vrot.lane.b32.xlu1 %v2487_v28, %s2164_s20  ;;  %v693_v7 = vmul.f32 %v691_v60, %v2487_v28 }
 0x1ac   : > { %638 = vst [vmem:[#allocation2 + $0x8] sm:$0xff] %v2489_v29  ;;  %v692_v8 = vmul.f32 %v691_v60, %v2489_v29  ;;  %v1608_v60 = vld [vmem:[#allocation8] ss:$0 sm:$0xff] }
 0x1ad   : > { %1807 = vmatpush1.bf16.msra.mxu0 %v1806_v26 }
 0x1ae   : > { %1809 = vmatprep.subr.bf16.mxu0 %v1808_v27 }
 0x1b1   : > { %1811 = vmatpush1.bf16.msra.mxu0 %v1810_v32 }
 0x1b2   : > { %v2547_v50 = vld [vmem:[#allocation2 + $0x11] sm:$0xff] }
 0x1b3   : > { %v2507_v36 = vld [vmem:[#allocation2 + $0x7] sm:$0xff]  ;;  %v2519_v40 = vld [vmem:[#allocation2 + $0xf] sm:$0xff] }
 0x1b4   : > { %644 = vrot.lane.b32.xlu0 %v2507_v36, %s2164_s20  ;;  %662 = vrot.lane.b32.xlu1 %v2507_v36, %s2165_s21  ;;  %v2553_v51 = vld [vmem:[#allocation2 + $0x9] sm:$0xff]  ;;  %v658_v49 = vmul.f32 %v657_v42, %v2507_v36  ;;  %v659_v56 = vmul.f32 %v657_v42, %v2519_v40  ;;  %v2586_v36 = vsub.s32 7, %v649_v34 }
 0x1b6   : > { %v725_v12 = vrot.slane %v640_v38, %v2586_v36  ;;  %v1607_v38 = vld [vmem:[#allocation6] ss:$0 sm:$0xff] }
 0x1b8   : > { %646 = vrot.lane.b32.xlu0 %v2519_v40, %s2164_s20  ;;  %664 = vrot.lane.b32.xlu1 %v2519_v40, %s2165_s21  ;;  %v727_v23 = vmul.f32 %v725_v12, %v2547_v50  ;;  %v726_v27 = vmul.f32 %v725_v12, %v2553_v51  ;;  %v1000_v12 = vld [vmem:[#allocation3] sm:$0x80] }
 0x1bc   : > { %676 = vrot.lane.b32.xlu0 %v2489_v29, %s2164_s20  ;;  %698 = vrot.lane.b32.xlu1 %v2487_v28, %s2165_s21  ;;  %v1606_v28 = vld [vmem:[%s2973_s3 + $0x8] ss:$0 sm:$0xff] }
 0x1c0   : > { %696 = vrot.lane.b32.xlu0 %v2489_v29, %s2165_s21  ;;  %712 = vrot.lane.b32.xlu1 %v2547_v50, %s2164_s20 }
 0x1c4   : > { %710 = vrot.lane.b32.xlu0 %v2553_v51, %s2164_s20  ;;  %732 = vrot.lane.b32.xlu1 %v2547_v50, %s2165_s21  ;;  %s532_s20 = scalar_lea.vmem %s2983_s13, %s1614_s29 }
 0x1c8   : > { %730 = vrot.lane.b32.xlu0 %v2553_v51, %s2165_s21 }
 0x21d   : > { %v679_v39 = vpop.permute.xlu1 %678 }
 0x21e   : > { %v685_v4 = vmul.f32 %v683_v57, %v679_v39 }
 0x226   : > { %v645_v44 = vpop.permute.xlu0 %644  ;;  %v663_v45 = vpop.permute.xlu1 %662 }
 0x227   : > { %v652_v47 = vmul.f32 %v651_v41, %v645_v44  ;;  %v670_v61 = vmul.f32 %v669_v52, %v663_v45 }
 0x229   : > { %v660_v58 = vadd.f32 %v658_v49, %v652_v47 }
 0x22a   : > { %v647_v53 = vpop.permute.xlu0 %646  ;;  %v665_v54 = vpop.permute.xlu1 %664 }
 0x22b   : > { %v653_v59 = vmul.f32 %v651_v41, %v647_v53  ;;  %v671_v63 = vmul.f32 %v669_v52, %v665_v54  ;;  %v672_v5 = vadd.f32 %v670_v61, %v660_v58  ;;  %v882_v54 = vld [vmem:[#allocation9 + $0xe8] sm:$0xff]  ;;  %v883_v58 = vld [vmem:[#allocation9 + $0xf0] sm:$0xff] }
 0x22d   : > { %v661_v62 = vadd.f32 %v659_v56, %v653_v59  ;;  %v884_v56 = vld [vmem:[#allocation9 + $0xf8] sm:$0xff] }
 0x22e   : > { %v677_v1 = vpop.permute.xlu0 %676  ;;  %v699_v3 = vpop.permute.xlu1 %698  ;;  %v1812_v51 = vpack.c.bf16 %v884_v56, %v882_v54 }
 0x22f   : > { %v673_v40 = vadd.f32 %v671_v63, %v661_v62  ;;  %v684_v6 = vmul.f32 %v683_v57, %v677_v1  ;;  %v705_v17 = vmul.f32 %v703_v2, %v699_v3  ;;  %v881_v57 = vld [vmem:[#allocation9 + $0xe0] sm:$0xff]  ;;  %v2610_v3 = vld [vmem:[#allocation12 + $0x8] sm:$0xff] }
 0x230   : > { %v1814_v59 = vpack.c.bf16 %v883_v58, %v881_v57  ;;  %1813 = vmatprep.subr.bf16.mxu0 %v1812_v51  ;;  %v1354_v58 = vld [vmem:[%s2981_s11 + $0x80] sm:$0xff] }
 0x231   : > { %v687_v9 = vadd.f32 %v685_v4, %v673_v40  ;;  %v686_v10 = vadd.f32 %v684_v6, %v672_v5  ;;  %v2618_v5 = vrot.slane %v2610_v3, %v2586_v36  ;;  %v2620_v40 = vld [vmem:[#allocation3 + $0x30] sm:$0x1] }
 0x232   : > { %v697_v13 = vpop.permute.xlu0 %696  ;;  %v713_v15 = vpop.permute.xlu1 %712  ;;  %1815 = vmatpush1.bf16.msra.mxu0 %v1814_v59  ;;  %v1355_v59 = vld [vmem:[%s2981_s11 + $0x88] sm:$0xff] }
 0x233   : > { %v695_v16 = vadd.f32 %v693_v7, %v687_v9  ;;  %v694_v18 = vadd.f32 %v692_v8, %v686_v10  ;;  %v704_v19 = vmul.f32 %v703_v2, %v697_v13  ;;  %v719_v21 = vmul.f32 %v717_v11, %v713_v15  ;;  %v2608_v2 = vld [vmem:[#allocation12] sm:$0xff]  ;;  %v2626_v7 = vld [vmem:[#allocation3 + $0x38] sm:$0x1]  ;;  %v885_v8 = vld [vmem:[#allocation11] sm:$0x3] }
 0x234   : > { %v2614_v4 = vrot.slane %v2608_v2, %v2586_v36  ;;  %v890_v9 = vrot.slane %v885_v8, %v2562_v35  ;;  %v894_v10 = vrot.slane %v885_v8, %v2564_v37  ;;  %v2636_v36 = vrot.slane %v2608_v2, %v2564_v37 }
 0x235   : > { %v707_v20 = vadd.f32 %v705_v17, %v695_v16  ;;  %v706_v24 = vadd.f32 %v704_v19, %v694_v18  ;;  %v2640_v13 = vrot.slane %v2610_v3, %v2564_v37  ;;  %v1001_v17 = vld [vmem:[#allocation3 + $0x8] sm:$0x80] }
 0x236   : > { %v711_v22 = vpop.permute.xlu0 %710  ;;  %v733_v29 = vpop.permute.xlu1 %732  ;;  %v2624_v6 = vmul.f32 %v2614_v4, %v2620_v40 }
 0x237   : > { %v721_v25 = vadd.f32 %v719_v21, %v707_v20  ;;  %v718_v26 = vmul.f32 %v717_v11, %v711_v22  ;;  %v739_v32 = vmul.f32 %v1606_v28, %v733_v29  ;;  %v1062_v20 = vmul.f32 %v2636_v36, %v1000_v12 }
 0x239   : > { %v720_v30 = vadd.f32 %v718_v26, %v706_v24  ;;  %v729_v31 = vadd.f32 %v727_v23, %v721_v25 }
 0x23a   : > { %v731_v34 = vpop.permute.xlu0 %730 }
 0x23b   : > { %v741_v39 = vadd.f32 %v739_v32, %v729_v31  ;;  %v728_v41 = vadd.f32 %v726_v27, %v720_v30  ;;  %v738_v42 = vmul.f32 %v1606_v28, %v731_v34  ;;  %v1063_v28 = vmul.f32 %v2640_v13, %v1001_v17 }
 0x23c   : > { %v1074_v30 = vrot.slane %v1062_v20, 7 }
 0x23d   : > { %v740_v44 = vadd.f32 %v738_v42, %v728_v41  ;;  %v750_v45 = vadd.f32 %v1607_v38, %v741_v39  ;;  %v1077_v34 = vrot.slane %v1063_v28, 7  ;;  %v1013_v41 = vrot.slane %v1000_v12, 7 }
 0x23f   : > { %v749_v47 = vadd.f32 %v1607_v38, %v740_v44  ;;  %v752_v49 = vmax.f32 %v750_v45, 0.0 }
 0x241   : > { %v751_v52 = vmax.f32 %v749_v47, 0.0  ;;  %v754_v50 = vmin.f32 %v752_v49, 6.0  ;;  %v1016_v47 = vrot.slane %v1001_v17, 7 }
 0x243   : > { %v753_v53 = vmin.f32 %v751_v52, 6.0 }
 0x245   : > { %1733 = vmatprep.mubr.f32.mxu1 %v753_v53 }
 0x246   : > { %1734 = vmatmul.mubr.f32.vlgmr.msra.gmra.mrb[0].mxu1 %v754_v50  ;;  %v1274_v50 = vrot.slane %v2624_v6, 1 }
 0x319   : > { %v1735_v61 = vpop.f32.mrb[0].mxu1 }
 0x31a   : > { %v844_v62 = vpop.f32.mrb[1].mxu1  ;;  %v2602_v1 = vadd.f32 %v1735_v61, %v1608_v60  ;;  %v1338_v61 = vld [vmem:[%s2981_s11] sm:$0xff] }
 0x31b   : > { %v2598_v63 = vadd.f32 %v1608_v60, %v844_v62  ;;  %v1816_v60 = vpack.c.bf16 %v1355_v59, %v1354_v58  ;;  %v1339_v62 = vld [vmem:[%s2981_s11 + $0x8] sm:$0xff] }
 0x31d   : > { %962 = vmatmul.mubr.f32.vlgmr.msra.gmra.mrb[2].mxu0 %v2598_v63  ;;  %1817 = vmatprep.subr.bf16.mxu1 %v1816_v60  ;;  %v1360_v60 = vld [vmem:[%s2981_s11 + $0xb0] sm:$0xff] }
 0x31e   : > { %967 = vmatprep.mubr.f32.mxu0 %v2163_v14  ;;  %v2630_v14 = vmul.f32 %v2618_v5, %v2626_v7 }
 0x320   : > { %v1276_v51 = vrot.slane %v2630_v14, 1 }
 0x321   : > { %968 = vmatmul.mubr.f32.gmra.mrb[4].mxu0 %v2602_v1 }
 0x3f0   : > { %v963_v11 = vpop.f32.mrb[2].mxu0 }
 0x3f1   : > { %v964_v15 = vadd.f32 %v963_v11, %v890_v9  ;;  %v965_v16 = vpop.f32.mrb[3].mxu0 }
 0x3f2   : > { %v966_v18 = vadd.f32 %v965_v16, %v894_v10 }
 0x3f3   : > { %v974_v19 = vmax.f32 %v964_v15, 0.0 }
 0x3f4   : > { %v975_v21 = vmax.f32 %v966_v18, 0.0  ;;  %v969_v22 = vpop.f32.mrb[4].mxu0  ;;  %v1356_v18 = vld [vmem:[%s2981_s11 + $0x90] sm:$0xff] }
 0x3f5   : > { %v2644_v29 = vmin.f32 %v974_v19, 6.0  ;;  %v970_v23 = vadd.f32 %v969_v22, %v890_v9  ;;  %v971_v24 = vpop.f32.mrb[5].mxu0  ;;  %v1818_v9 = vpack.c.bf16 %v1339_v62, %v1338_v61  ;;  %v1340_v22 = vld [vmem:[%s2981_s11 + $0x10] sm:$0xff] }
 0x3f6   : > { %v2646_v25 = vmin.f32 %v975_v21, 6.0  ;;  %v972_v26 = vadd.f32 %v971_v24, %v894_v10  ;;  %v1344_v61 = vld [vmem:[%s2981_s11 + $0x30] sm:$0xff] }
 0x3f7   : > { %992 = vst [vmem:[#allocation3 + $0x10] sm:$0xff] %v2644_v29  ;;  %v976_v27 = vmax.f32 %v970_v23, 0.0  ;;  %1123 = vrot.lane.b32.xlu0 %v2644_v29, %s2166_s16  ;;  %v2653_v31 = vmul.f32 %v2636_v36, %v2644_v29  ;;  %v1014_v45 = vrot.slane %v2644_v29, 7  ;;  %1819 = vmatpush3.bf16.msra.mxu1 %v1818_v9  ;;  %v1363_v9 = vld [vmem:[%s2981_s11 + $0xc8] sm:$0xff] }
 0x3f8   : > { %993 = vst [vmem:[#allocation3 + $0x18] sm:$0xff] %v2646_v25  ;;  %v977_v32 = vmax.f32 %v972_v26, 0.0  ;;  %1127 = vrot.lane.b32.xlu1 %v2646_v25, %s2166_s16  ;;  %v2660_v38 = vmul.f32 %v2640_v13, %v2646_v25  ;;  %v1017_v52 = vrot.slane %v2646_v25, 7 }
 0x3f9   : > { %v2662_v39 = vmin.f32 %v976_v27, 6.0  ;;  %v1075_v42 = vrot.slane %v2653_v31, 7  ;;  %v1015_v14 = vsel %vm1012_vm2, %v1013_v41, %v1014_v45  ;;  %v1359_v41 = vld [vmem:[%s2981_s11 + $0xa8] sm:$0xff]  ;;  %v1361_v31 = vld [vmem:[%s2981_s11 + $0xb8] sm:$0xff] }
 0x3fa   : > { %v2665_v44 = vmin.f32 %v977_v32, 6.0  ;;  %v1078_v49 = vrot.slane %v2660_v38, 7  ;;  %v1018_v11 = vsel %vm1012_vm2, %v1016_v47, %v1017_v52  ;;  %v1345_v38 = vld [vmem:[%s2981_s11 + $0x38] sm:$0xff] }
 0x3fb   : > { %994 = vst [vmem:[#allocation3 + $0x20] sm:$0xff] %v2662_v39  ;;  %1167 = vrot.lane.b32.xlu0 %v2644_v29, %s2167_s18  ;;  %v1258_v53 = vmul.f32 %v2614_v4, %v2662_v39  ;;  %v2679_v54 = vsel %vm1012_vm2, %v1074_v30, %v1075_v42  ;;  %v1830_v62 = vpack.c.bf16 %v1345_v38, %v1344_v61 }
 0x3fc   : > { %995 = vst [vmem:[#allocation3 + $0x28] sm:$0xff] %v2665_v44  ;;  %1171 = vrot.lane.b32.xlu1 %v2646_v25, %s2167_s18  ;;  %v1259_v56 = vmul.f32 %v2618_v5, %v2665_v44  ;;  %v2690_v57 = vsel %vm1012_vm2, %v1077_v34, %v1078_v49  ;;  %v1358_v34 = vld [vmem:[%s2981_s11 + $0xa0] sm:$0xff] }
 0x3fd   : > { %v1269_v6 = vrot.slane %v1258_v53, 1  ;;  %v1824_v53 = vpack.c.bf16 %v1359_v41, %v1358_v34  ;;  %v1350_v41 = vld [vmem:[%s2981_s11 + $0x60] sm:$0xff] }
 0x3fe   : > { %v2707_v8 = vld [vmem:[#allocation3 + $0x10] sm:$0xfe]  ;;  %v1272_v10 = vrot.slane %v1259_v56, 1 }
 0x3ff   : > { %1027 = vrot.lane.b32.xlu0 %v1015_v14, %s2166_s16  ;;  %v1256_v12 = vmul.f32 %v2614_v4, %v2707_v8  ;;  %v2715_v15 = vld [vmem:[#allocation3 + $0x18] sm:$0xfe]  ;;  %v2718_v16 = vsel %vm1205_vm3, %v1269_v6, %v1274_v50  ;;  %v1342_v50 = vld [vmem:[%s2981_s11 + $0x20] sm:$0xff] }
 0x400   : > { %1031 = vrot.lane.b32.xlu1 %v1018_v11, %s2166_s16  ;;  %v1257_v17 = vmul.f32 %v2618_v5, %v2715_v15  ;;  %v1357_v4 = vld [vmem:[%s2981_s11 + $0x98] sm:$0xff]  ;;  %v2730_v19 = vsel %vm1205_vm3, %v1272_v10, %v1276_v51 }
 0x401   : > { %v1268_v20 = vrot.slane %v1256_v12, 1  ;;  %v1820_v21 = vpack.c.bf16 %v1357_v4, %v1356_v18  ;;  %v1341_v5 = vld [vmem:[%s2981_s11 + $0x18] sm:$0xff]  ;;  %v1347_v12 = vld [vmem:[%s2981_s11 + $0x48] sm:$0xff] }
 0x402   : > { %v1004_v28 = vld [vmem:[#allocation3 + $0x20] sm:$0x7f]  ;;  %v1271_v23 = vrot.slane %v1257_v17, 1  ;;  %v1822_v24 = vpack.c.bf16 %v1341_v5, %v1340_v22  ;;  %v1209_v5 = vrot.slane %v2715_v15, 1 }
 0x403   : > { %1092 = vrot.lane.b32.xlu0 %v1015_v14, %s2167_s18  ;;  %v1066_v26 = vmul.f32 %v2636_v36, %v1004_v28  ;;  %v1005_v27 = vld [vmem:[#allocation3 + $0x28] sm:$0x7f]  ;;  %1821 = vmatprep.subr.bf16.mxu1 %v1820_v21  ;;  %v2741_v30 = vsel %vm1205_vm3, %v1268_v20, %v1269_v6  ;;  %v1362_v14 = vld [vmem:[%s2981_s11 + $0xc0] sm:$0xff]  ;;  %v1364_v20 = vld [vmem:[%s2981_s11 + $0xd0] sm:$0xff] }
 0x404   : > { %1096 = vrot.lane.b32.xlu1 %v1018_v11, %s2167_s18  ;;  %v1067_v32 = vmul.f32 %v2640_v13, %v1005_v27  ;;  %1823 = vmatpush3.bf16.msra.mxu1 %v1822_v24  ;;  %v2752_v36 = vsel %vm1205_vm3, %v1271_v23, %v1272_v10  ;;  %v1343_v13 = vld [vmem:[%s2981_s11 + $0x28] sm:$0xff]  ;;  %v1021_v6 = vrot.slane %v1005_v27, 7  ;;  %v1832_v10 = vpack.c.bf16 %v1363_v9, %v1362_v14  ;;  %v1346_v11 = vld [vmem:[%s2981_s11 + $0x40] sm:$0xff]  ;;  %v1365_v21 = vld [vmem:[%s2981_s11 + $0xd8] sm:$0xff] }
 0x405   : > { %v1080_v47 = vrot.slane %v1066_v26, 7  ;;  %v1826_v51 = vpack.c.bf16 %v1343_v13, %v1342_v50  ;;  %1825 = vmatprep.subr.bf16.mxu1 %v1824_v53  ;;  %v1834_v18 = vpack.c.bf16 %v1347_v12, %v1346_v11  ;;  %v1836_v22 = vpack.c.bf16 %v1365_v21, %v1364_v20  ;;  %v1366_v15 = vld [vmem:[%s2981_s11 + $0xe0] sm:$0xff]  ;;  %v1367_v26 = vld [vmem:[%s2981_s11 + $0xe8] sm:$0xff] }
 0x406   : > { %v1082_v56 = vrot.slane %v1067_v32, 7  ;;  %v1022_v4 = vsel %vm1012_vm2, %v1017_v52, %v1021_v6  ;;  %v1348_v52 = vld [vmem:[%s2981_s11 + $0x50] sm:$0xff]  ;;  %v1207_v23 = vrot.slane %v2662_v39, 1  ;;  %v1212_v32 = vrot.slane %v2620_v40, 1 }
 0x407   : > { %1125 = vrot.lane.b32.xlu0 %v2662_v39, %s2166_s16  ;;  %v2765_v58 = vsel %vm1012_vm2, %v1075_v42, %v1080_v47  ;;  %v1828_v42 = vpack.c.bf16 %v1361_v31, %v1360_v60  ;;  %v1840_v34 = vpack.c.bf16 %v1367_v26, %v1366_v15  ;;  %v1351_v47 = vld [vmem:[%s2981_s11 + $0x68] sm:$0xff]  ;;  %v1214_v50 = vrot.slane %v2626_v7, 1  ;;  %v1368_v40 = vld [vmem:[%s2981_s11 + $0xf0] sm:$0xff]  ;;  %v1353_v31 = vld [vmem:[%s2981_s11 + $0x78] sm:$0xff] }
 0x408   : > { %1129 = vrot.lane.b32.xlu1 %v2665_v44, %s2166_s16  ;;  %v2772_v59 = vsel %vm1012_vm2, %v1078_v49, %v1082_v56  ;;  %1827 = vmatpush3.bf16.msra.mxu1 %v1826_v51  ;;  %v1019_v49 = vrot.slane %v1004_v28, 7  ;;  %v1349_v28 = vld [vmem:[%s2981_s11 + $0x58] sm:$0xff]  ;;  %v1842_v13 = vpack.c.bf16 %v1351_v47, %v1350_v41  ;;  %v1213_v51 = vsel %vm1205_vm3, %v1207_v23, %v1212_v32  ;;  %v1352_v7 = vld [vmem:[%s2981_s11 + $0x70] sm:$0xff] }
 0x409   : > { %1829 = vmatprep.subr.bf16.mxu1 %v1828_v42  ;;  %v1838_v24 = vpack.c.bf16 %v1349_v28, %v1348_v52  ;;  %v1369_v56 = vld [vmem:[%s2981_s11 + $0xf8] sm:$0xff]  ;;  %v1846_v61 = vpack.c.bf16 %v1353_v31, %v1352_v7  ;;  %v2867_v6 = vand.u32 127, %v648_v33  ;;  %v1045_v9 = vrot.slane %v2608_v2, %v2562_v35 }
 0x40a   : > { %v1020_v17 = vsel %vm1012_vm2, %v1014_v45, %v1019_v49  ;;  %v1206_v45 = vrot.slane %v2707_v8, 1  ;;  %v1210_v8 = vrot.slane %v2665_v44, 1  ;;  %v1844_v60 = vpack.c.bf16 %v1369_v56, %v1368_v40 }
 0x40b   : > { %1169 = vrot.lane.b32.xlu0 %v2662_v39, %s2167_s18  ;;  %vm1037_vm4 = vcmp.lt.s32.totalorder %v2867_v6, 16  ;;  %v1108_v20 = vrot.slane %v2608_v2, %v2571_v43  ;;  %v1112_v21 = vrot.slane %v2610_v3, %v2571_v43  ;;  %v1142_v52 = vrot.slane %v2610_v3, %v2573_v46 }
 0x40c   : > { %1173 = vrot.lane.b32.xlu1 %v2665_v44, %s2167_s18  ;;  %1831 = vmatpush3.bf16.msra.mxu1 %v1830_v62  ;;  %v1208_v27 = vsel %vm1205_vm3, %v1206_v45, %v1207_v23  ;;  %v1211_v53 = vsel %vm1205_vm3, %v1209_v5, %v1210_v8  ;;  %v1215_v42 = vsel %vm1205_vm3, %v1210_v8, %v1214_v50  ;;  %vm1100_vm5 = vcmp.lt.s32.totalorder %v2867_v6, 112 }
 0x40d   : > { %1833 = vmatprep.subr.bf16.mxu1 %v1832_v10  ;;  %v1049_v10 = vrot.slane %v2610_v3, %v2562_v35  ;;  %v1138_v5 = vrot.slane %v2608_v2, %v2573_v46  ;;  %v1158_v23 = vrot.slane %v2610_v3, %v2575_v48 }
 0x40f   : > { %1029 = vrot.lane.b32.xlu0 %v1020_v17, %s2166_s16  ;;  %v1160_v56 = vmul.f32 %v1158_v23, %v2646_v25 }
 0x410   : > { %1033 = vrot.lane.b32.xlu1 %v1022_v4, %s2166_s16  ;;  %1835 = vmatpush3.bf16.msra.mxu1 %v1834_v18 }
 0x411   : > { %1837 = vmatprep.subr.bf16.mxu1 %v1836_v22  ;;  %v1154_v22 = vrot.slane %v2608_v2, %v2575_v48 }
 0x413   : > { %1094 = vrot.lane.b32.xlu0 %v1020_v17, %s2167_s18 }
 0x414   : > { %1098 = vrot.lane.b32.xlu1 %v1022_v4, %s2167_s18  ;;  %1839 = vmatpush3.bf16.msra.mxu1 %v1838_v24 }
 0x415   : > { %1841 = vmatprep.subr.bf16.mxu1 %v1840_v34 }
 0x417   : > { %1220 = vrot.lane.b32.xlu0 %v1208_v27, %s2166_s16 }
 0x418   : > { %1224 = vrot.lane.b32.xlu1 %v1211_v53, %s2166_s16  ;;  %1843 = vmatpush3.bf16.msra.mxu1 %v1842_v13 }
 0x419   : > { %1845 = vmatprep.subr.bf16.mxu1 %v1844_v60 }
 0x41b   : > { %1222 = vrot.lane.b32.xlu0 %v1213_v51, %s2166_s16 }
 0x41c   : > { %1226 = vrot.lane.b32.xlu1 %v1215_v42, %s2166_s16  ;;  %1847 = vmatpush3.bf16.msra.mxu1 %v1846_v61 }
 0x41f   : > { %1286 = vrot.lane.b32.xlu0 %v1208_v27, %s2167_s18 }
 0x420   : > { %1290 = vrot.lane.b32.xlu1 %v1211_v53, %s2167_s18 }
 0x423   : > { %1288 = vrot.lane.b32.xlu0 %v1213_v51, %s2167_s18  ;;  %v1159_v51 = vmul.f32 %v1154_v22, %v2644_v29  ;;  %v1186_v29 = vrot.slane %v2610_v3, %v2579_v55 }
 0x424   : > { %1292 = vrot.lane.b32.xlu1 %v1215_v42, %s2167_s18 }
 0x469   : > { %v1124_v38 = vpop.permute.xlu0 %1123 }
 0x46a   : > { %v1128_v49 = vpop.permute.xlu1 %1127 }
 0x46b   : > { %v1131_v24 = vsel %vm1037_vm4, %v1124_v38, %v1128_v49  ;;  %v1133_v43 = vsel %vm1037_vm4, %v1128_v49, %v1124_v38 }
 0x46c   : > { %v1143_v48 = vmul.f32 %v1138_v5, %v1133_v43  ;;  %v1144_v41 = vmul.f32 %v1142_v52, %v1131_v24 }
 0x46d   : > { %v1168_v62 = vpop.permute.xlu0 %1167 }
 0x46e   : > { %v1172_v14 = vpop.permute.xlu1 %1171 }
 0x471   : > { %v1028_v11 = vpop.permute.xlu0 %1027 }
 0x472   : > { %v1032_v12 = vpop.permute.xlu1 %1031 }
 0x473   : > { %v1038_v17 = vsel %vm1037_vm4, %v1028_v11, %v1032_v12  ;;  %v1040_v18 = vsel %vm1037_vm4, %v1032_v12, %v1028_v11  ;;  %v1182_v12 = vrot.slane %v2608_v2, %v2579_v55 }
 0x474   : > { %v1050_v4 = vmul.f32 %v1045_v9, %v1040_v18  ;;  %v1051_v33 = vmul.f32 %v1049_v10, %v1038_v17  ;;  %v1161_v17 = vmul.f32 %v1154_v22, %v2662_v39  ;;  %v1162_v18 = vmul.f32 %v1158_v23, %v2665_v44 }
 0x475   : > { %v1093_v45 = vpop.permute.xlu0 %1092  ;;  %v1235_v44 = vrot.slane %v2608_v2, %v2584_v0  ;;  %v1239_v22 = vrot.slane %v2610_v3, %v2584_v0 }
 0x476   : > { %v1097_v28 = vpop.permute.xlu1 %1096  ;;  %v1088_v46 = vadd.f32 %v2679_v54, %v1050_v4  ;;  %v1089_v26 = vadd.f32 %v2690_v57, %v1051_v33  ;;  %v1175_v4 = vsel %vm1100_vm5, %v1168_v62, %v1172_v14  ;;  %v1177_v33 = vsel %vm1100_vm5, %v1172_v14, %v1168_v62 }
 0x477   : > { %v1101_v8 = vsel %vm1100_vm5, %v1093_v45, %v1097_v28  ;;  %v1103_v15 = vsel %vm1100_vm5, %v1097_v28, %v1093_v45  ;;  %v1187_v24 = vmul.f32 %v1182_v12, %v1175_v4  ;;  %v1188_v43 = vmul.f32 %v1186_v29, %v1177_v33 }
 0x478   : > { %v1113_v27 = vmul.f32 %v1108_v20, %v1101_v8  ;;  %v1114_v32 = vmul.f32 %v1112_v21, %v1103_v15 }
 0x479   : > { %v1126_v34 = vpop.permute.xlu0 %1125 }
 0x47a   : > { %v1117_v47 = vadd.f32 %v1113_v27, %v1088_v46  ;;  %v1118_v53 = vadd.f32 %v1114_v32, %v1089_v26  ;;  %v1130_v50 = vpop.permute.xlu1 %1129 }
 0x47c   : > { %v1147_v13 = vadd.f32 %v1143_v48, %v1117_v47  ;;  %v1148_v40 = vadd.f32 %v1144_v41, %v1118_v53 }
 0x47d   : > { %v1170_v60 = vpop.permute.xlu0 %1169 }
 0x47e   : > { %v1174_v7 = vpop.permute.xlu1 %1173  ;;  %v1163_v31 = vadd.f32 %v1159_v51, %v1147_v13  ;;  %v1164_v54 = vadd.f32 %v1160_v56, %v1148_v40 }
 0x47f   : > { %v1176_v26 = vsel %vm1100_vm5, %v1170_v60, %v1174_v7  ;;  %v1178_v2 = vsel %vm1100_vm5, %v1174_v7, %v1170_v60 }
 0x480   : > { %v1191_v3 = vadd.f32 %v1187_v24, %v1163_v31  ;;  %v1189_v48 = vmul.f32 %v1182_v12, %v1176_v26  ;;  %v1190_v41 = vmul.f32 %v1186_v29, %v1178_v2 }
 0x481   : > { %v1030_v42 = vpop.permute.xlu0 %1029 }
 0x482   : > { %v1034_v57 = vpop.permute.xlu1 %1033 }
 0x483   : > { %v1039_v61 = vsel %vm1037_vm4, %v1030_v42, %v1034_v57  ;;  %v1041_v38 = vsel %vm1037_vm4, %v1034_v57, %v1030_v42  ;;  %v1314_v57 = vld [vmem:[#allocation14] sm:$0x3] }
 0x484   : > { %v1052_v49 = vmul.f32 %v1045_v9, %v1041_v38  ;;  %v1053_v11 = vmul.f32 %v1049_v10, %v1039_v61  ;;  %v1132_v9 = vsel %vm1037_vm4, %v1126_v34, %v1130_v50  ;;  %v1134_v10 = vsel %vm1037_vm4, %v1130_v50, %v1126_v34  ;;  %v1609_v38 = vld [vmem:[#allocation12 + $0x10] ss:$0 sm:$0xff] }
 0x485   : > { %v1095_v25 = vpop.permute.xlu0 %1094  ;;  %v1145_v8 = vmul.f32 %v1138_v5, %v1134_v10  ;;  %v1146_v15 = vmul.f32 %v1142_v52, %v1132_v9  ;;  %v1323_v9 = vrot.slane %v1314_v57, %v2564_v37 }
 0x486   : > { %v1099_v45 = vpop.permute.xlu1 %1098  ;;  %v1090_v62 = vadd.f32 %v2765_v58, %v1052_v49  ;;  %v1091_v14 = vadd.f32 %v2772_v59, %v1053_v11  ;;  %v1192_v58 = vadd.f32 %v1188_v43, %v1164_v54  ;;  %v1610_v49 = vld [vmem:[#allocation12 + $0x18] ss:$0 sm:$0xff] }
 0x487   : > { %v1102_v55 = vsel %vm1100_vm5, %v1095_v25, %v1099_v45  ;;  %v1104_v39 = vsel %vm1100_vm5, %v1099_v45, %v1095_v25 }
 0x488   : > { %v1115_v28 = vmul.f32 %v1108_v20, %v1102_v55  ;;  %v1116_v23 = vmul.f32 %v1112_v21, %v1104_v39 }
 0x489   : > { %v1221_v46 = vpop.permute.xlu0 %1220 }
 0x48a   : > { %v1119_v27 = vadd.f32 %v1115_v28, %v1090_v62  ;;  %v1120_v32 = vadd.f32 %v1116_v23, %v1091_v14  ;;  %v1225_v0 = vpop.permute.xlu1 %1224 }
 0x48b   : > { %v1228_v59 = vsel %vm1037_vm4, %v1221_v46, %v1225_v0  ;;  %v1230_v20 = vsel %vm1037_vm4, %v1225_v0, %v1221_v46 }
 0x48c   : > { %v1149_v21 = vadd.f32 %v1145_v8, %v1119_v27  ;;  %v1150_v5 = vadd.f32 %v1146_v15, %v1120_v32  ;;  %v1240_v52 = vmul.f32 %v1235_v44, %v1230_v20  ;;  %v1241_v34 = vmul.f32 %v1239_v22, %v1228_v59 }
 0x48d   : > { %v1223_v47 = vpop.permute.xlu0 %1222 }
 0x48e   : > { %v1244_v53 = vadd.f32 %v1240_v52, %v1191_v3  ;;  %v1245_v50 = vadd.f32 %v1241_v34, %v1192_v58  ;;  %v1227_v13 = vpop.permute.xlu1 %1226  ;;  %v1165_v40 = vadd.f32 %v1161_v17, %v1149_v21  ;;  %v1166_v56 = vadd.f32 %v1162_v18, %v1150_v5  ;;  %v1611_v3 = vld [vmem:[%s2982_s12] ss:$0 sm:$0xff] }
 0x48f   : > { %v1229_v51 = vsel %vm1037_vm4, %v1223_v47, %v1227_v13  ;;  %v1231_v60 = vsel %vm1037_vm4, %v1227_v13, %v1223_v47  ;;  %v1319_v18 = vrot.slane %v1314_v57, %v2562_v35 }
 0x490   : > { %v1193_v7 = vadd.f32 %v1189_v48, %v1165_v40  ;;  %v1194_v31 = vadd.f32 %v1190_v41, %v1166_v56  ;;  %v1242_v54 = vmul.f32 %v1235_v44, %v1231_v60  ;;  %v1243_v42 = vmul.f32 %v1239_v22, %v1229_v51 }
 0x491   : > { %v1287_v61 = vpop.permute.xlu0 %1286  ;;  %v1282_v11 = vadd.f32 %v2741_v30, %v1244_v53  ;;  %v1283_v12 = vadd.f32 %v2752_v36, %v1245_v50 }
 0x492   : > { %v1246_v29 = vadd.f32 %v1242_v54, %v1193_v7  ;;  %v1247_v25 = vadd.f32 %v1243_v42, %v1194_v31  ;;  %v1291_v17 = vpop.permute.xlu1 %1290 }
 0x493   : > { %v1294_v4 = vsel %vm1100_vm5, %v1287_v61, %v1291_v17  ;;  %v1296_v33 = vsel %vm1100_vm5, %v1291_v17, %v1287_v61 }
 0x494   : > { %v1306_v10 = vmul.f32 %v1609_v38, %v1294_v4  ;;  %v1307_v45 = vmul.f32 %v1610_v49, %v1296_v33  ;;  %v1284_v55 = vadd.f32 %v2718_v16, %v1246_v29  ;;  %v1285_v30 = vadd.f32 %v2730_v19, %v1247_v25 }
 0x495   : > { %v1289_v36 = vpop.permute.xlu0 %1288 }
 0x496   : > { %v1310_v39 = vadd.f32 %v1306_v10, %v1282_v11  ;;  %v1311_v44 = vadd.f32 %v1307_v45, %v1283_v12  ;;  %v1293_v22 = vpop.permute.xlu1 %1292 }
 0x497   : > { %v1295_v35 = vsel %vm1100_vm5, %v1289_v36, %v1293_v22  ;;  %v1297_v62 = vsel %vm1100_vm5, %v1293_v22, %v1289_v36 }
 0x498   : > { %v1326_v14 = vadd.f32 %v1319_v18, %v1310_v39  ;;  %v1308_v28 = vmul.f32 %v1609_v38, %v1295_v35  ;;  %v1309_v23 = vmul.f32 %v1610_v49, %v1297_v62  ;;  %v1327_v37 = vadd.f32 %v1323_v9, %v1311_v44 }
 0x49a   : > { %v1330_v24 = vmax.f32 %v1326_v14, 0.0  ;;  %v1312_v43 = vadd.f32 %v1308_v28, %v1284_v55  ;;  %v1313_v8 = vadd.f32 %v1309_v23, %v1285_v30  ;;  %v1331_v16 = vmax.f32 %v1327_v37, 0.0 }
 0x49c   : > { %v1335_v15 = vmin.f32 %v1331_v16, 6.0  ;;  %v1334_v19 = vmin.f32 %v1330_v24, 6.0  ;;  %v1329_v46 = vadd.f32 %v1323_v9, %v1313_v8  ;;  %v1328_v26 = vadd.f32 %v1319_v18, %v1312_v43 }
 0x49e   : > { %1441 = vmatprep.mubr.f32.mxu1 %v1335_v15  ;;  %v1333_v2 = vmax.f32 %v1329_v46, 0.0  ;;  %v1332_v27 = vmax.f32 %v1328_v26, 0.0 }
 0x49f   : > { %1442 = vmatmul.mubr.f32.vlgmr.msra.gmra.mrb[2].mxu1 %v1334_v19 }
 0x4a0   : > { %v1337_v32 = vmin.f32 %v1333_v2, 6.0  ;;  %v1336_v6 = vmin.f32 %v1332_v27, 6.0 }
 0x4a2   : > { %1446 = vmatprep.mubr.f32.mxu1 %v1337_v32 }
 0x4a3   : > { %1447 = vmatmul.mubr.f32.gmra.mrb[4].mxu1 %v1336_v6 }
 0x572   : > { %v1676_v0 = vpop.f32.mrb[2].mxu1 }
 0x573   : > { %v1677_v58 = vpop.f32.mrb[3].mxu1 }
 0x574   : > { %v1678_v59 = vadd.f32 %v1677_v58, %v1676_v0 }
 0x576   : > { %v1444_v20 = vadd.f32 %v1678_v59, %v1611_v3  ;;  %v1679_v21 = vpop.f32.mrb[4].mxu1 }
 0x577   : > { %v1680_v5 = vpop.f32.mrb[5].mxu1 }
 0x578   : > { %v1452_v52 = vadd.f32 %v1444_v20, %v2598_v63  ;;  %v1681_v34 = vadd.f32 %v1680_v5, %v1679_v21 }
 0x57a   : > { %1454 = vst [vmem:[%s532_s20] sm:$0xff] %v1452_v52  ;;  %v1449_v48 = vadd.f32 %v1681_v34, %v1611_v3 }
 0x57c   : > { %v1453_v41 = vadd.f32 %v1449_v48, %v2602_v1 }
 0x57e   : > { %1455 = vst [vmem:[%s532_s20 + $0x8] sm:$0xff] %v1453_v41 }
 0x57f PF: > { %s3002_s21 = sld [smem:[#allocation19_spill]] }
 0x585   : > { %s27_s25 = sadd.s32 1, %s3002_s21  }
 0x586   : > { %p24_p9 = scmp.ge.s32.totalorder %s27_s25, 4  }
 0x588   :  { %26 = sbr.rel (!%p24_p9) target bundleno = 6 (0x6), region = 133 }
 0x58f   :  { %1477 = vsyncpa [#allocation5], 1 }
 0x590   :  { %1479 = vsyncpa [#allocation5 + $0x1], 1 }
 0x591   :  { %1480 = vsyncpa [#allocation7], 1 }
 0x592   :  { %1481 = vsyncpa [#allocation10], 1 }
 0x593   :  { %1482 = vsyncpa [#allocation13], 1 }

</bundles_post_ra>
